<compile_context>
chip_gen: v5e
topology: v5e:2x2
jax: 0.10.0
libtpu: 0.0.40
codegen_flags: <defaults>
</compile_context>

<pallas_src>
import functools

import jax
import jax.numpy as jnp
from jax.experimental import pallas as pl
from jax.experimental.pallas import tpu as pltpu


def _elu(x):
    # ELU(alpha=1) in f32; clamp the exp argument for safety.
    return jnp.where(x > 0, x, jnp.exp(jnp.minimum(x, 0.0)) - 1.0)


def _round_up(x, m):
    return (x + m - 1) // m * m


# ----------------------- kernel 1: layer1 fully fused ------------------------

def _layer1_kernel(p_ref, w_ref, b_ref, o_ref):
    """conv1 (bf16 matmul) + bias + ELU + 2x2 maxpool.

    p_ref: [4, tm, 9] bf16 — leading axis is the 2x2 pool-window position, so
    the pool is a max over 4 small matmuls.  bias-add and ELU are monotone, so
    they are applied once after the max (== maxpool(ELU(conv + bias)) exactly).
    """
    w = w_ref[...]
    m = jnp.dot(p_ref[0], w, preferred_element_type=jnp.float32)
    for k in range(1, 4):
        m = jnp.maximum(m, jnp.dot(p_ref[k], w,
                                   preferred_element_type=jnp.float32))
    o_ref[...] = _elu(m + b_ref[...])


def layer1_fused(x_nhwc, w1, b1):
    """x: [B,H,W,1] f32, w1: [3,3,1,16] (BN folded), b1: [16] -> [B,H//2+1,...,16]."""
    B, H, W, _ = x_nhwc.shape
    xp = jnp.pad(x_nhwc[..., 0], ((0, 0), (2, 2), (2, 2)))        # pad=2
    ch, cw = H + 2, W + 2                                         # conv output size
    # gather-free im2col: 9 shifted slices, k-order = (kh, kw) to match w1 flatten
    cols = [xp[:, di:di + ch, dj:dj + cw]
            for di in range(3) for dj in range(3)]
    patches = jnp.stack(cols, axis=-1)                            # [B, ch, cw, 9]
    ph, pw = ch // 2, cw // 2                                      # floor-mode pool
    patches = patches[:, :2 * ph, :2 * pw, :]
    patches = patches.reshape(B, ph, 2, pw, 2, 9)
    patches = patches.transpose(2, 4, 0, 1, 3, 5).reshape(4, B * ph * pw, 9)

    M = B * ph * pw
    n_tiles = 2 if M >= 16 else 1            # 2 M-tiles -> both v7x TensorCores
    tm = _round_up(pl.cdiv(M, n_tiles), 8)
    Mp = tm * n_tiles
    patches = jnp.pad(patches, ((0, 0), (0, Mp - M), (0, 0))).astype(jnp.bfloat16)
    wf = w1.reshape(9, 16).astype(jnp.bfloat16)
    bf = b1.reshape(1, 16).astype(jnp.float32)

    cost = pl.CostEstimate(flops=2 * 4 * Mp * 9 * 16,
                           transcendentals=Mp * 16,
                           bytes_accessed=patches.size * 2 + wf.size * 2
                           + Mp * 16 * 4)
    out = pl.pallas_call(
        _layer1_kernel,
        out_shape=jax.ShapeDtypeStruct((Mp, 16), jnp.float32),
        grid=(n_tiles,),
        in_specs=[
            pl.BlockSpec((4, tm, 9), lambda i: (0, i, 0)),
            pl.BlockSpec((9, 16), lambda i: (0, 0)),      # weights resident
            pl.BlockSpec((1, 16), lambda i: (0, 0)),
        ],
        out_specs=pl.BlockSpec((tm, 16), lambda i: (i, 0)),
        compiler_params=pltpu.CompilerParams(
            dimension_semantics=("parallel",),
            vmem_limit_bytes=32 * 1024 * 1024),
        cost_estimate=cost,
    )(patches, wf, bf)
    return out[:M].reshape(B, ph, pw, 16)


# ------------------- kernel 2: layer2 + SPP fully fused ----------------------

def _layer2_spp_kernel(p_ref, w_ref, b_ref, y4_ref, y2_ref, *, batch):
    """conv2 (bf16 matmul) + bias + ELU + nested SPP maxpools (4x4 & 2x2 bins).

    p_ref: [4, 16B, 144] bf16; leading axis = innermost 2x2 window position,
    rows ordered (eh, ew, qh, qw, b), so the coarser pool level is a max over
    four 8-row-aligned contiguous blocks (no in-kernel reshape/gather).
    """
    w = w_ref[...]
    bias = b_ref[...]
    p4 = jnp.dot(p_ref[0], w, preferred_element_type=jnp.float32)
    for d in range(1, 4):
        p4 = jnp.maximum(p4, jnp.dot(p_ref[d], w,
                                     preferred_element_type=jnp.float32))
    nb = 4 * batch
    p2 = jnp.maximum(jnp.maximum(p4[0 * nb:1 * nb], p4[1 * nb:2 * nb]),
                     jnp.maximum(p4[2 * nb:3 * nb], p4[3 * nb:4 * nb]))
    y4_ref[...] = _elu(p4 + bias)     # 4x4-bin SPP features, rows (e, q, b)
    y2_ref[...] = _elu(p2 + bias)     # 2x2-bin SPP features, rows (q, b)


def layer2_spp_fused(x, w2, b2):
    """x: [B,13,13,16] f32; w2: [3,3,16,32] (BN folded); b2: [32] -> spp [B,672].

    On the 8x8 conv2 output, the [4,2,1]-bin SPP pools nest as repeated 2x2
    max pooling, so conv + ELU + all pools fuse into one kernel.
    """
    B, S, _, _ = x.shape
    assert S == 13, "fused SPP path assumes a 13x13 layer-1 map (24x24 input)"
    # TODO(synk): general input sizes need the generic (non-nested) SPP path.
    xp = jnp.pad(x, ((0, 0), (2, 2), (2, 2), (0, 0)))             # [B,17,17,16]
    # gather-free strided im2col for the stride-2 conv (output 8x8)
    cols = [xp[:, di:di + 16:2, dj:dj + 16:2, :]
            for di in range(3) for dj in range(3)]
    patches = jnp.concatenate(cols, axis=-1)                      # [B,8,8,144]
    # split h = 4*qh + 2*eh + dh (same for w) -> nested 2x2 pooling groups
    patches = patches.reshape(B, 2, 2, 2, 2, 2, 2, 144)
    patches = patches.transpose(3, 6, 2, 5, 1, 4, 0, 7)           # (dh,dw,eh,ew,qh,qw,b,k)
    patches = patches.reshape(4, 16 * B, 144).astype(jnp.bfloat16)
    wf = w2.reshape(144, 32).astype(jnp.bfloat16)
    bf = b2.reshape(1, 32).astype(jnp.float32)

    cost = pl.CostEstimate(flops=2 * 4 * 16 * B * 144 * 32,
                           transcendentals=20 * B * 32,
                           bytes_accessed=patches.size * 2 + wf.size * 2
                           + 20 * B * 32 * 4)
    y4, y2 = pl.pallas_call(
        functools.partial(_layer2_spp_kernel, batch=B),
        out_shape=(jax.ShapeDtypeStruct((16 * B, 32), jnp.float32),
                   jax.ShapeDtypeStruct((4 * B, 32), jnp.float32)),
        grid=(1,),
        in_specs=[
            pl.BlockSpec((4, 16 * B, 144), lambda i: (0, 0, 0)),
            pl.BlockSpec((144, 32), lambda i: (0, 0)),
            pl.BlockSpec((1, 32), lambda i: (0, 0)),
        ],
        out_specs=(pl.BlockSpec((16 * B, 32), lambda i: (0, 0)),
                   pl.BlockSpec((4 * B, 32), lambda i: (0, 0))),
        compiler_params=pltpu.CompilerParams(
            dimension_semantics=("arbitrary",),
            vmem_limit_bytes=32 * 1024 * 1024),
        cost_estimate=cost,
    )(patches, wf, bf)

    # reorder to PyTorch flatten order (per bin: channel, then h, then w) and
    # assemble a lane-dense [B, 672] feature slab for the fc kernel.
    f4 = y4.reshape(2, 2, 2, 2, B, 32).transpose(4, 5, 2, 0, 3, 1).reshape(B, 512)
    f2 = y2.reshape(2, 2, B, 32).transpose(2, 3, 0, 1).reshape(B, 128)
    # 1x1 bin = max over the four 2x2 bins (ELU monotone -> exact); tiny glue op.
    f1 = jnp.max(y2.reshape(4, B, 32), axis=0)                    # [B, 32]
    return jnp.concatenate([f4, f2, f1], axis=1)                  # [B, 672]


# -------------------------- kernel 3: fc1+ELU+fc2 ----------------------------

def _fc_kernel(x_ref, w1_ref, b1_ref, w2_ref, b2_ref, o_ref):
    """fc1 + ELU + fc2 fused; Dropout(p=0.1) is identity in eval mode."""
    h = jnp.dot(x_ref[...], w1_ref[...], preferred_element_type=jnp.float32)
    h = _elu(h + b1_ref[...])
    o = jnp.dot(h.astype(jnp.bfloat16), w2_ref[...],
                preferred_element_type=jnp.float32)
    o_ref[...] = o + b2_ref[...]


def fc_fused(spp, w1, b1, w2, b2):
    B, fin = spp.shape
    hid, nout = w1.shape[1], w2.shape[1]
    x = spp.astype(jnp.bfloat16)
    w1b = w1.astype(jnp.bfloat16)
    w2b = w2.astype(jnp.bfloat16)
    cost = pl.CostEstimate(flops=2 * B * (fin * hid + hid * nout),
                           transcendentals=B * hid,
                           bytes_accessed=x.size * 2 + w1b.size * 2
                           + w2b.size * 2 + (hid + nout) * 4 + B * nout * 4)
    return pl.pallas_call(
        _fc_kernel,
        out_shape=jax.ShapeDtypeStruct((B, nout), jnp.float32),
        grid=(1,),
        in_specs=[
            pl.BlockSpec((B, fin), lambda i: (0, 0)),
            pl.BlockSpec((fin, hid), lambda i: (0, 0)),
            pl.BlockSpec((1, hid), lambda i: (0, 0)),
            pl.BlockSpec((hid, nout), lambda i: (0, 0)),
            pl.BlockSpec((1, nout), lambda i: (0, 0)),
        ],
        out_specs=pl.BlockSpec((B, nout), lambda i: (0, 0)),
        compiler_params=pltpu.CompilerParams(
            dimension_semantics=("arbitrary",),
            vmem_limit_bytes=32 * 1024 * 1024),
        cost_estimate=cost,
    )(x, w1b, b1.reshape(1, hid).astype(jnp.float32), w2b,
      b2.reshape(1, nout).astype(jnp.float32))


# ------------------------------- glue (JAX) ----------------------------------

def _fold_bn(w, b, gamma, beta, mean, var, eps=1e-5):
    scale = gamma / jnp.sqrt(var + eps)
    return w * scale[None, None, None, :], (b - mean) * scale + beta


def init_params(key):
    ks = jax.random.split(key, 6)

    def xavier(k, kh, kw, cin, cout):
        fan_in, fan_out = cin * kh * kw, cout * kh * kw
        bound = (6.0 / (fan_in + fan_out)) ** 0.5
        return jax.random.uniform(k, (kh, kw, cin, cout), jnp.float32,
                                  -bound, bound)

    def lin(k, fin, fout):
        kw_, kb_ = jax.random.split(k)
        bound = 1.0 / (fin ** 0.5)
        w = jax.random.uniform(kw_, (fin, fout), jnp.float32, -bound, bound)
        b = jax.random.uniform(kb_, (fout,), jnp.float32, -bound, bound)
        return w, b

    p = {}
    p["w1"] = xavier(ks[0], 3, 3, 1, 16)
    p["b1"] = jax.random.uniform(ks[1], (16,), jnp.float32, -1.0 / 3, 1.0 / 3)
    p["w2"] = xavier(ks[2], 3, 3, 16, 32)
    p["b2"] = jax.random.uniform(ks[3], (32,), jnp.float32, -1.0 / 12, 1.0 / 12)
    # BatchNorm params at fresh init (eval mode -> folded into the convs)
    for i, c in ((1, 16), (2, 32)):
        p[f"bn{i}_gamma"] = jnp.ones((c,), jnp.float32)
        p[f"bn{i}_beta"] = jnp.zeros((c,), jnp.float32)
        p[f"bn{i}_mean"] = jnp.zeros((c,), jnp.float32)
        p[f"bn{i}_var"] = jnp.ones((c,), jnp.float32)
    p["fc1_w"], p["fc1_b"] = lin(ks[4], 32 * 4 * 4 + 32 * 2 * 2 + 32, 256)
    p["fc2_w"], p["fc2_b"] = lin(ks[5], 256, 10)
    return p


def ownnet_forward(params, x_nchw):
    x = jnp.transpose(x_nchw, (0, 2, 3, 1)).astype(jnp.float32)   # NCHW -> NHWC
    w1, b1 = _fold_bn(params["w1"], params["b1"], params["bn1_gamma"],
                      params["bn1_beta"], params["bn1_mean"], params["bn1_var"])
    y = layer1_fused(x, w1, b1)                                   # [B,13,13,16]
    w2, b2 = _fold_bn(params["w2"], params["b2"], params["bn2_gamma"],
                      params["bn2_beta"], params["bn2_mean"], params["bn2_var"])
    spp = layer2_spp_fused(y, w2, b2)                             # [B,672]
    return fc_fused(spp, params["fc1_w"], params["fc1_b"],
                    params["fc2_w"], params["fc2_b"])             # [B,10]


if __name__ == "__main__":
    key = jax.random.PRNGKey(0)
    pkey, xkey = jax.random.split(key)
    params = init_params(pkey)
    # Input chosen so the SPP bins come out exactly [4x4, 2x2, 1x1] -> 672 feats.
    x = jax.random.normal(xkey, (2, 1, 24, 24), jnp.float32)
    out = jax.jit(ownnet_forward)(params, x)
    out = jax.block_until_ready(out)
    assert out.shape == (2, 10) and out.dtype == jnp.float32
    print("KERNEL_OK")
</pallas_src>

<mosaic_0001>
module attributes {stable_mosaic.version = 11 : i64} {
  func.func @_layer1_kernel(%arg0: i32, %arg1: memref<4x176x9xbf16, #tpu.memory_space<vmem>>, %arg2: memref<9x16xbf16, #tpu.memory_space<vmem>>, %arg3: memref<1x16xf32, #tpu.memory_space<vmem>>, %arg4: memref<176x16xf32, #tpu.memory_space<vmem>>) attributes {dimension_semantics = [#tpu.dimension_semantics<parallel>], iteration_bounds = array<i64: 2>, scalar_prefetch = 0 : i64, scratch_operands = 0 : i64, tpu.core_type = #tpu.core_type<tc>, window_params = [{transform_indices = @transform_0, window_bounds = array<i64: 4, 176, 9>}, {pipeline_mode = #tpu.pipeline_mode<synchronous>, transform_indices = @transform_1, window_bounds = array<i64: 9, 16>}, {pipeline_mode = #tpu.pipeline_mode<synchronous>, transform_indices = @transform_2, window_bounds = array<i64: 1, 16>}, {transform_indices = @transform_3, window_bounds = array<i64: 176, 16>}]} {
    %c0 = arith.constant 0 : index
    %c0_0 = arith.constant 0 : index
    %0 = vector.load %arg2[%c0, %c0_0] : memref<9x16xbf16, #tpu.memory_space<vmem>>, vector<9x16xbf16>
    %c0_1 = arith.constant 0 : index
    %c0_2 = arith.constant 0 : index
    %c0_3 = arith.constant 0 : index
    %1 = vector.load %arg1[%c0_1, %c0_2, %c0_3] : memref<4x176x9xbf16, #tpu.memory_space<vmem>>, vector<1x176x9xbf16>
    %2 = vector.shape_cast %1 : vector<1x176x9xbf16> to vector<176x9xbf16>
    %cst = arith.constant dense<0.000000e+00> : vector<176x16xf32>
    %3 = tpu.matmul %2, %0, %cst {dimension_numbers = #tpu.dot_dimension_numbers<[1], [0], [0], [1], [0, 0, 1, 1], [], []>} : vector<176x9xbf16>, vector<9x16xbf16>, vector<176x16xf32> -> vector<176x16xf32>
    %c1 = arith.constant 1 : index
    %c0_4 = arith.constant 0 : index
    %c0_5 = arith.constant 0 : index
    %4 = vector.load %arg1[%c1, %c0_4, %c0_5] : memref<4x176x9xbf16, #tpu.memory_space<vmem>>, vector<1x176x9xbf16>
    %5 = vector.shape_cast %4 : vector<1x176x9xbf16> to vector<176x9xbf16>
    %cst_6 = arith.constant dense<0.000000e+00> : vector<176x16xf32>
    %6 = tpu.matmul %5, %0, %cst_6 {dimension_numbers = #tpu.dot_dimension_numbers<[1], [0], [0], [1], [0, 0, 1, 1], [], []>} : vector<176x9xbf16>, vector<9x16xbf16>, vector<176x16xf32> -> vector<176x16xf32>
    %7 = arith.maximumf %3, %6 : vector<176x16xf32>
    %c2 = arith.constant 2 : index
    %c0_7 = arith.constant 0 : index
    %c0_8 = arith.constant 0 : index
    %8 = vector.load %arg1[%c2, %c0_7, %c0_8] : memref<4x176x9xbf16, #tpu.memory_space<vmem>>, vector<1x176x9xbf16>
    %9 = vector.shape_cast %8 : vector<1x176x9xbf16> to vector<176x9xbf16>
    %cst_9 = arith.constant dense<0.000000e+00> : vector<176x16xf32>
    %10 = tpu.matmul %9, %0, %cst_9 {dimension_numbers = #tpu.dot_dimension_numbers<[1], [0], [0], [1], [0, 0, 1, 1], [], []>} : vector<176x9xbf16>, vector<9x16xbf16>, vector<176x16xf32> -> vector<176x16xf32>
    %11 = arith.maximumf %7, %10 : vector<176x16xf32>
    %c3 = arith.constant 3 : index
    %c0_10 = arith.constant 0 : index
    %c0_11 = arith.constant 0 : index
    %12 = vector.load %arg1[%c3, %c0_10, %c0_11] : memref<4x176x9xbf16, #tpu.memory_space<vmem>>, vector<1x176x9xbf16>
    %13 = vector.shape_cast %12 : vector<1x176x9xbf16> to vector<176x9xbf16>
    %cst_12 = arith.constant dense<0.000000e+00> : vector<176x16xf32>
    %14 = tpu.matmul %13, %0, %cst_12 {dimension_numbers = #tpu.dot_dimension_numbers<[1], [0], [0], [1], [0, 0, 1, 1], [], []>} : vector<176x9xbf16>, vector<9x16xbf16>, vector<176x16xf32> -> vector<176x16xf32>
    %15 = arith.maximumf %11, %14 : vector<176x16xf32>
    %c0_13 = arith.constant 0 : index
    %c0_14 = arith.constant 0 : index
    %16 = vector.load %arg3[%c0_13, %c0_14] : memref<1x16xf32, #tpu.memory_space<vmem>>, vector<1x16xf32>
    %17 = vector.broadcast %16 : vector<1x16xf32> to vector<176x16xf32>
    %18 = arith.addf %15, %17 : vector<176x16xf32>
    %cst_15 = arith.constant 0.000000e+00 : f32
    %19 = vector.broadcast %cst_15 : f32 to vector<176x16xf32>
    %20 = arith.cmpf ogt, %18, %19 : vector<176x16xf32>
    %cst_16 = arith.constant 0.000000e+00 : f32
    %21 = vector.broadcast %cst_16 : f32 to vector<176x16xf32>
    %22 = arith.minimumf %18, %21 : vector<176x16xf32>
    %23 = math.exp %22 : vector<176x16xf32>
    %cst_17 = arith.constant 1.000000e+00 : f32
    %24 = vector.broadcast %cst_17 : f32 to vector<176x16xf32>
    %25 = arith.subf %23, %24 : vector<176x16xf32>
    %26 = arith.select %20, %18, %25 : vector<176x16xi1>, vector<176x16xf32>
    %c0_18 = arith.constant 0 : index
    %c0_19 = arith.constant 0 : index
    %27 = vector.load %arg4[%c0_18, %c0_19] : memref<176x16xf32, #tpu.memory_space<vmem>>, vector<176x16xf32>
    tpu.vector_store %arg4[%c0_18, %c0_19], %26 {strides = array<i32>} : memref<176x16xf32, #tpu.memory_space<vmem>>, vector<176x16xf32>,
    return
  }
  func.func @transform_0(%arg0: i32) -> (i32, i32, i32) {
    %c0_i32 = arith.constant 0 : i32
    %c0_i32_0 = arith.constant 0 : i32
    %c0_i32_1 = arith.constant 0 : i32
    return %c0_i32, %arg0, %c0_i32_0 : i32, i32, i32
  }
  func.func @transform_1(%arg0: i32) -> (i32, i32) {
    %c0_i32 = arith.constant 0 : i32
    %c0_i32_0 = arith.constant 0 : i32
    %c0_i32_1 = arith.constant 0 : i32
    return %c0_i32, %c0_i32_0 : i32, i32
  }
  func.func @transform_2(%arg0: i32) -> (i32, i32) {
    %c0_i32 = arith.constant 0 : i32
    %c0_i32_0 = arith.constant 0 : i32
    %c0_i32_1 = arith.constant 0 : i32
    return %c0_i32, %c0_i32_0 : i32, i32
  }
  func.func @transform_3(%arg0: i32) -> (i32, i32) {
    %c0_i32 = arith.constant 0 : i32
    %c0_i32_0 = arith.constant 0 : i32
    return %arg0, %c0_i32 : i32, i32
  }
}

module attributes {stable_mosaic.version = 11 : i64} {
  func.func @_layer2_spp_kernel(%arg0: i32, %arg1: memref<4x32x144xbf16, #tpu.memory_space<vmem>>, %arg2: memref<144x32xbf16, #tpu.memory_space<vmem>>, %arg3: memref<1x32xf32, #tpu.memory_space<vmem>>, %arg4: memref<32x32xf32, #tpu.memory_space<vmem>>, %arg5: memref<8x32xf32, #tpu.memory_space<vmem>>) attributes {dimension_semantics = [#tpu.dimension_semantics<arbitrary>], iteration_bounds = array<i64: 1>, scalar_prefetch = 0 : i64, scratch_operands = 0 : i64, tpu.core_type = #tpu.core_type<tc>, window_params = [{pipeline_mode = #tpu.pipeline_mode<synchronous>, transform_indices = @transform_0, window_bounds = array<i64: 4, 32, 144>}, {pipeline_mode = #tpu.pipeline_mode<synchronous>, transform_indices = @transform_1, window_bounds = array<i64: 144, 32>}, {pipeline_mode = #tpu.pipeline_mode<synchronous>, transform_indices = @transform_2, window_bounds = array<i64: 1, 32>}, {pipeline_mode = #tpu.pipeline_mode<synchronous>, transform_indices = @transform_3, window_bounds = array<i64: 32, 32>}, {pipeline_mode = #tpu.pipeline_mode<synchronous>, transform_indices = @transform_4, window_bounds = array<i64: 8, 32>}]} {
    %c0 = arith.constant 0 : index
    %c0_0 = arith.constant 0 : index
    %0 = vector.load %arg2[%c0, %c0_0] : memref<144x32xbf16, #tpu.memory_space<vmem>>, vector<144x32xbf16>
    %c0_1 = arith.constant 0 : index
    %c0_2 = arith.constant 0 : index
    %1 = vector.load %arg3[%c0_1, %c0_2] : memref<1x32xf32, #tpu.memory_space<vmem>>, vector<1x32xf32>
    %c0_3 = arith.constant 0 : index
    %c0_4 = arith.constant 0 : index
    %c0_5 = arith.constant 0 : index
    %2 = vector.load %arg1[%c0_3, %c0_4, %c0_5] : memref<4x32x144xbf16, #tpu.memory_space<vmem>>, vector<1x32x144xbf16>
    %3 = vector.shape_cast %2 : vector<1x32x144xbf16> to vector<32x144xbf16>
    %cst = arith.constant dense<0.000000e+00> : vector<32x32xf32>
    %4 = tpu.matmul %3, %0, %cst {dimension_numbers = #tpu.dot_dimension_numbers<[1], [0], [0], [1], [0, 0, 1, 1], [], []>} : vector<32x144xbf16>, vector<144x32xbf16>, vector<32x32xf32> -> vector<32x32xf32>
    %c1 = arith.constant 1 : index
    %c0_6 = arith.constant 0 : index
    %c0_7 = arith.constant 0 : index
    %5 = vector.load %arg1[%c1, %c0_6, %c0_7] : memref<4x32x144xbf16, #tpu.memory_space<vmem>>, vector<1x32x144xbf16>
    %6 = vector.shape_cast %5 : vector<1x32x144xbf16> to vector<32x144xbf16>
    %cst_8 = arith.constant dense<0.000000e+00> : vector<32x32xf32>
    %7 = tpu.matmul %6, %0, %cst_8 {dimension_numbers = #tpu.dot_dimension_numbers<[1], [0], [0], [1], [0, 0, 1, 1], [], []>} : vector<32x144xbf16>, vector<144x32xbf16>, vector<32x32xf32> -> vector<32x32xf32>
    %8 = arith.maximumf %4, %7 : vector<32x32xf32>
    %c2 = arith.constant 2 : index
    %c0_9 = arith.constant 0 : index
    %c0_10 = arith.constant 0 : index
    %9 = vector.load %arg1[%c2, %c0_9, %c0_10] : memref<4x32x144xbf16, #tpu.memory_space<vmem>>, vector<1x32x144xbf16>
    %10 = vector.shape_cast %9 : vector<1x32x144xbf16> to vector<32x144xbf16>
    %cst_11 = arith.constant dense<0.000000e+00> : vector<32x32xf32>
    %11 = tpu.matmul %10, %0, %cst_11 {dimension_numbers = #tpu.dot_dimension_numbers<[1], [0], [0], [1], [0, 0, 1, 1], [], []>} : vector<32x144xbf16>, vector<144x32xbf16>, vector<32x32xf32> -> vector<32x32xf32>
    %12 = arith.maximumf %8, %11 : vector<32x32xf32>
    %c3 = arith.constant 3 : index
    %c0_12 = arith.constant 0 : index
    %c0_13 = arith.constant 0 : index
    %13 = vector.load %arg1[%c3, %c0_12, %c0_13] : memref<4x32x144xbf16, #tpu.memory_space<vmem>>, vector<1x32x144xbf16>
    %14 = vector.shape_cast %13 : vector<1x32x144xbf16> to vector<32x144xbf16>
    %cst_14 = arith.constant dense<0.000000e+00> : vector<32x32xf32>
    %15 = tpu.matmul %14, %0, %cst_14 {dimension_numbers = #tpu.dot_dimension_numbers<[1], [0], [0], [1], [0, 0, 1, 1], [], []>} : vector<32x144xbf16>, vector<144x32xbf16>, vector<32x32xf32> -> vector<32x32xf32>
    %16 = arith.maximumf %12, %15 : vector<32x32xf32>
    %17 = vector.extract_strided_slice %16 {offsets = [0, 0], sizes = [8, 32], strides = [1, 1]} : vector<32x32xf32> to vector<8x32xf32>
    %18 = vector.extract_strided_slice %16 {offsets = [8, 0], sizes = [8, 32], strides = [1, 1]} : vector<32x32xf32> to vector<8x32xf32>
    %19 = arith.maximumf %17, %18 : vector<8x32xf32>
    %20 = vector.extract_strided_slice %16 {offsets = [16, 0], sizes = [8, 32], strides = [1, 1]} : vector<32x32xf32> to vector<8x32xf32>
    %21 = vector.extract_strided_slice %16 {offsets = [24, 0], sizes = [8, 32], strides = [1, 1]} : vector<32x32xf32> to vector<8x32xf32>
    %22 = arith.maximumf %20, %21 : vector<8x32xf32>
    %23 = arith.maximumf %19, %22 : vector<8x32xf32>
    %24 = vector.broadcast %1 : vector<1x32xf32> to vector<32x32xf32>
    %25 = arith.addf %16, %24 : vector<32x32xf32>
    %cst_15 = arith.constant 0.000000e+00 : f32
    %26 = vector.broadcast %cst_15 : f32 to vector<32x32xf32>
    %27 = arith.cmpf ogt, %25, %26 : vector<32x32xf32>
    %cst_16 = arith.constant 0.000000e+00 : f32
    %28 = vector.broadcast %cst_16 : f32 to vector<32x32xf32>
    %29 = arith.minimumf %25, %28 : vector<32x32xf32>
    %30 = math.exp %29 : vector<32x32xf32>
    %cst_17 = arith.constant 1.000000e+00 : f32
    %31 = vector.broadcast %cst_17 : f32 to vector<32x32xf32>
    %32 = arith.subf %30, %31 : vector<32x32xf32>
    %33 = arith.select %27, %25, %32 : vector<32x32xi1>, vector<32x32xf32>
    %c0_18 = arith.constant 0 : index
    %c0_19 = arith.constant 0 : index
    %34 = vector.load %arg4[%c0_18, %c0_19] : memref<32x32xf32, #tpu.memory_space<vmem>>, vector<32x32xf32>
    tpu.vector_store %arg4[%c0_18, %c0_19], %33 {strides = array<i32>} : memref<32x32xf32, #tpu.memory_space<vmem>>, vector<32x32xf32>,
    %35 = vector.broadcast %1 : vector<1x32xf32> to vector<8x32xf32>
    %36 = arith.addf %23, %35 : vector<8x32xf32>
    %cst_20 = arith.constant 0.000000e+00 : f32
    %37 = vector.broadcast %cst_20 : f32 to vector<8x32xf32>
    %38 = arith.cmpf ogt, %36, %37 : vector<8x32xf32>
    %cst_21 = arith.constant 0.000000e+00 : f32
    %39 = vector.broadcast %cst_21 : f32 to vector<8x32xf32>
    %40 = arith.minimumf %36, %39 : vector<8x32xf32>
    %41 = math.exp %40 : vector<8x32xf32>
    %cst_22 = arith.constant 1.000000e+00 : f32
    %42 = vector.broadcast %cst_22 : f32 to vector<8x32xf32>
    %43 = arith.subf %41, %42 : vector<8x32xf32>
    %44 = arith.select %38, %36, %43 : vector<8x32xi1>, vector<8x32xf32>
    %c0_23 = arith.constant 0 : index
    %c0_24 = arith.constant 0 : index
    %45 = vector.load %arg5[%c0_23, %c0_24] : memref<8x32xf32, #tpu.memory_space<vmem>>, vector<8x32xf32>
    tpu.vector_store %arg5[%c0_23, %c0_24], %44 {strides = array<i32>} : memref<8x32xf32, #tpu.memory_space<vmem>>, vector<8x32xf32>,
    return
  }
  func.func @transform_0(%arg0: i32) -> (i32, i32, i32) {
    %c0_i32 = arith.constant 0 : i32
    %c0_i32_0 = arith.constant 0 : i32
    %c0_i32_1 = arith.constant 0 : i32
    %c0_i32_2 = arith.constant 0 : i32
    return %c0_i32, %c0_i32_0, %c0_i32_1 : i32, i32, i32
  }
  func.func @transform_1(%arg0: i32) -> (i32, i32) {
    %c0_i32 = arith.constant 0 : i32
    %c0_i32_0 = arith.constant 0 : i32
    %c0_i32_1 = arith.constant 0 : i32
    return %c0_i32, %c0_i32_0 : i32, i32
  }
  func.func @transform_2(%arg0: i32) -> (i32, i32) {
    %c0_i32 = arith.constant 0 : i32
    %c0_i32_0 = arith.constant 0 : i32
    %c0_i32_1 = arith.constant 0 : i32
    return %c0_i32, %c0_i32_0 : i32, i32
  }
  func.func @transform_3(%arg0: i32) -> (i32, i32) {
    %c0_i32 = arith.constant 0 : i32
    %c0_i32_0 = arith.constant 0 : i32
    %c0_i32_1 = arith.constant 0 : i32
    return %c0_i32, %c0_i32_0 : i32, i32
  }
  func.func @transform_4(%arg0: i32) -> (i32, i32) {
    %c0_i32 = arith.constant 0 : i32
    %c0_i32_0 = arith.constant 0 : i32
    %c0_i32_1 = arith.constant 0 : i32
    return %c0_i32, %c0_i32_0 : i32, i32
  }
}

module attributes {stable_mosaic.version = 11 : i64} {
  func.func @_fc_kernel(%arg0: i32, %arg1: memref<2x672xbf16, #tpu.memory_space<vmem>>, %arg2: memref<672x256xbf16, #tpu.memory_space<vmem>>, %arg3: memref<1x256xf32, #tpu.memory_space<vmem>>, %arg4: memref<256x10xbf16, #tpu.memory_space<vmem>>, %arg5: memref<1x10xf32, #tpu.memory_space<vmem>>, %arg6: memref<2x10xf32, #tpu.memory_space<vmem>>) attributes {dimension_semantics = [#tpu.dimension_semantics<arbitrary>], iteration_bounds = array<i64: 1>, scalar_prefetch = 0 : i64, scratch_operands = 0 : i64, tpu.core_type = #tpu.core_type<tc>, window_params = [{pipeline_mode = #tpu.pipeline_mode<synchronous>, transform_indices = @transform_0, window_bounds = array<i64: 2, 672>}, {pipeline_mode = #tpu.pipeline_mode<synchronous>, transform_indices = @transform_1, window_bounds = array<i64: 672, 256>}, {pipeline_mode = #tpu.pipeline_mode<synchronous>, transform_indices = @transform_2, window_bounds = array<i64: 1, 256>}, {pipeline_mode = #tpu.pipeline_mode<synchronous>, transform_indices = @transform_3, window_bounds = array<i64: 256, 10>}, {pipeline_mode = #tpu.pipeline_mode<synchronous>, transform_indices = @transform_4, window_bounds = array<i64: 1, 10>}, {pipeline_mode = #tpu.pipeline_mode<synchronous>, transform_indices = @transform_5, window_bounds = array<i64: 2, 10>}]} {
    %c0 = arith.constant 0 : index
    %c0_0 = arith.constant 0 : index
    %0 = vector.load %arg1[%c0, %c0_0] : memref<2x672xbf16, #tpu.memory_space<vmem>>, vector<2x672xbf16>
    %c0_1 = arith.constant 0 : index
    %c0_2 = arith.constant 0 : index
    %1 = vector.load %arg2[%c0_1, %c0_2] : memref<672x256xbf16, #tpu.memory_space<vmem>>, vector<672x256xbf16>
    %cst = arith.constant dense<0.000000e+00> : vector<2x256xf32>
    %2 = tpu.matmul %0, %1, %cst {dimension_numbers = #tpu.dot_dimension_numbers<[1], [0], [0], [1], [0, 0, 1, 1], [], []>} : vector<2x672xbf16>, vector<672x256xbf16>, vector<2x256xf32> -> vector<2x256xf32>
    %c0_3 = arith.constant 0 : index
    %c0_4 = arith.constant 0 : index
    %3 = vector.load %arg3[%c0_3, %c0_4] : memref<1x256xf32, #tpu.memory_space<vmem>>, vector<1x256xf32>
    %4 = vector.broadcast %3 : vector<1x256xf32> to vector<2x256xf32>
    %5 = arith.addf %2, %4 : vector<2x256xf32>
    %cst_5 = arith.constant 0.000000e+00 : f32
    %6 = vector.broadcast %cst_5 : f32 to vector<2x256xf32>
    %7 = arith.cmpf ogt, %5, %6 : vector<2x256xf32>
    %cst_6 = arith.constant 0.000000e+00 : f32
    %8 = vector.broadcast %cst_6 : f32 to vector<2x256xf32>
    %9 = arith.minimumf %5, %8 : vector<2x256xf32>
    %10 = math.exp %9 : vector<2x256xf32>
    %cst_7 = arith.constant 1.000000e+00 : f32
    %11 = vector.broadcast %cst_7 : f32 to vector<2x256xf32>
    %12 = arith.subf %10, %11 : vector<2x256xf32>
    %13 = arith.select %7, %5, %12 : vector<2x256xi1>, vector<2x256xf32>
    %14 = arith.truncf %13 : vector<2x256xf32> to vector<2x256xbf16>
    %c0_8 = arith.constant 0 : index
    %c0_9 = arith.constant 0 : index
    %15 = vector.load %arg4[%c0_8, %c0_9] : memref<256x10xbf16, #tpu.memory_space<vmem>>, vector<256x10xbf16>
    %cst_10 = arith.constant dense<0.000000e+00> : vector<2x10xf32>
    %16 = tpu.matmul %14, %15, %cst_10 {dimension_numbers = #tpu.dot_dimension_numbers<[1], [0], [0], [1], [0, 0, 1, 1], [], []>} : vector<2x256xbf16>, vector<256x10xbf16>, vector<2x10xf32> -> vector<2x10xf32>
    %c0_11 = arith.constant 0 : index
    %c0_12 = arith.constant 0 : index
    %17 = vector.load %arg5[%c0_11, %c0_12] : memref<1x10xf32, #tpu.memory_space<vmem>>, vector<1x10xf32>
    %18 = vector.broadcast %17 : vector<1x10xf32> to vector<2x10xf32>
    %19 = arith.addf %16, %18 : vector<2x10xf32>
    %c0_13 = arith.constant 0 : index
    %c0_14 = arith.constant 0 : index
    %20 = vector.load %arg6[%c0_13, %c0_14] : memref<2x10xf32, #tpu.memory_space<vmem>>, vector<2x10xf32>
    tpu.vector_store %arg6[%c0_13, %c0_14], %19 {strides = array<i32>} : memref<2x10xf32, #tpu.memory_space<vmem>>, vector<2x10xf32>,
    return
  }
  func.func @transform_0(%arg0: i32) -> (i32, i32) {
    %c0_i32 = arith.constant 0 : i32
    %c0_i32_0 = arith.constant 0 : i32
    %c0_i32_1 = arith.constant 0 : i32
    return %c0_i32, %c0_i32_0 : i32, i32
  }
  func.func @transform_1(%arg0: i32) -> (i32, i32) {
    %c0_i32 = arith.constant 0 : i32
    %c0_i32_0 = arith.constant 0 : i32
    %c0_i32_1 = arith.constant 0 : i32
    return %c0_i32, %c0_i32_0 : i32, i32
  }
  func.func @transform_2(%arg0: i32) -> (i32, i32) {
    %c0_i32 = arith.constant 0 : i32
    %c0_i32_0 = arith.constant 0 : i32
    %c0_i32_1 = arith.constant 0 : i32
    return %c0_i32, %c0_i32_0 : i32, i32
  }
  func.func @transform_3(%arg0: i32) -> (i32, i32) {
    %c0_i32 = arith.constant 0 : i32
    %c0_i32_0 = arith.constant 0 : i32
    %c0_i32_1 = arith.constant 0 : i32
    return %c0_i32, %c0_i32_0 : i32, i32
  }
  func.func @transform_4(%arg0: i32) -> (i32, i32) {
    %c0_i32 = arith.constant 0 : i32
    %c0_i32_0 = arith.constant 0 : i32
    %c0_i32_1 = arith.constant 0 : i32
    return %c0_i32, %c0_i32_0 : i32, i32
  }
  func.func @transform_5(%arg0: i32) -> (i32, i32) {
    %c0_i32 = arith.constant 0 : i32
    %c0_i32_0 = arith.constant 0 : i32
    %c0_i32_1 = arith.constant 0 : i32
    return %c0_i32, %c0_i32_0 : i32, i32
  }
}

</mosaic_0001>

<bundles_post_ra>
// kernel: ownnet_forward.3
= control target key start
LH: loop header
LB: loop body
LE: loop exit
PB: predicated region body
PF: predicated region fallthrough
CT: control target
= control target key end

     0   :  { %s2073_s12 = smov 0   ;;  %s2075_s13 = smov 0   ;;  %s2386_s0 = inlined_call_operand.vmem [shape: bf16[4,352,9], index: 0, kind: input, shape index: {}]   ;;  %s2387_s1 = inlined_call_operand.vmem [shape: bf16[9,16], index: 1, kind: input, shape index: {}]   ;;  %s2388_s2 = inlined_call_operand.vmem [shape: f32[1,16], index: 2, kind: input, shape index: {}]   ;;  %s2389_s3 = inlined_call_operand.vmem [shape: f32[352,16], index: 3, kind: output, shape index: {}]  }
   0x1   :  { %s2077_s14 = smov 0  }
   0x2 LB: > { %s1589_s15 = sadd.s32 4294967295, %s2050_s14   ;;  %s2090_s16 = sadd.s32 1, %s2050_s14   ;;  %s2050_s14 = sphi %s2077_s14, %s2392_s14   ;;  %s2046_s13 = sphi %s2075_s13, %s2391_s13   ;;  %s2042_s12 = sphi %s2073_s12, %s2390_s12  }
   0x3   : > { %s17_s17 = ssub.s32 %s2050_s14, %s2090_s16  ;;  %s20_s18 = sadd.s32 1, %s2046_s13 }
   0x4   : > { %p18_p0 = scmp.eq.s32.totalorder %s17_s17, 0  ;;  %p27_p1 = scmp.ne.s32.totalorder %s2046_s13, %s2042_s12 }
   0x5   : > { %p28_p2 = scmp.eq.s32.totalorder %s2050_s14, 0  ;;  %p1592_p4 = scmp.ge.s32.totalorder %s2050_s14, 2 }
   0x6   : > { %s2099_s19 = scalar_select %p18_p0, %s2046_s13, %s20_s18  }
   0x7   : > { %p29_p3 = por %p28_p2, %p27_p1  ;;  %127 = sbr.rel (%p1592_p4) target bundleno = 61 (0x3d), region = 24 }
   0xc   : > { %130 = sbr.rel (!%p29_p3) target bundleno = 61 (0x3d), region = 28  ;;  %s132_s20 = sand.u32 (%p29_p3), 1, %s2046_s13  }
   0xd   : > { %s1910_s21 = smul.u32 (%p29_p3), 88, %s2050_s14 }
   0xe   : > { %s1956_s22 = smul.u32 (%p29_p3), 352, %s132_s20 }
   0xf   : > { %s2107_s25 = scalar_lea.vmem (%p29_p3), %s2386_s0, %s1910_s21 }
  0x10   : > { %v154_v0 = vld [vmem:[%s2107_s25] sm:$0xff] (%p29_p3)   ;;  %v158_v1 = vld [vmem:[%s2107_s25 + $0x8] sm:$0xff] (%p29_p3)   ;;  %v162_v2 = vld [vmem:[%s2107_s25 + $0x10] sm:$0xff] (%p29_p3)   ;;  %s2112_s26 = scalar_lea.vmem (%p29_p3), [#allocation2], %s1956_s22 }
  0x11   : > { %155 = vst [vmem:[%s2112_s26] sm:$0xff] %v154_v0   ;;  %v166_v3 = vld [vmem:[%s2107_s25 + $0x18] sm:$0xff]   ;;  %v170_v4 = vld [vmem:[%s2107_s25 + $0x20] sm:$0xff]   ;;  %v174_v5 = vld [vmem:[%s2107_s25 + $0x28] sm:$0xff]  }
  0x12   : > { %159 = vst [vmem:[%s2112_s26 + $0x8] sm:$0xff] %v158_v1   ;;  %v178_v6 = vld [vmem:[%s2107_s25 + $0x30] sm:$0xff]   ;;  %v182_v7 = vld [vmem:[%s2107_s25 + $0x38] sm:$0xff]   ;;  %v186_v8 = vld [vmem:[%s2107_s25 + $0x40] sm:$0xff]  }
  0x13   : > { %163 = vst [vmem:[%s2112_s26 + $0x10] sm:$0xff] %v162_v2   ;;  %v190_v9 = vld [vmem:[%s2107_s25 + $0x48] sm:$0xff]   ;;  %v194_v10 = vld [vmem:[%s2107_s25 + $0x50] sm:$0xff]   ;;  %v202_v12 = vld [vmem:[%s2107_s25 + $0xb8] sm:$0xff]  }
  0x14   : > { %167 = vst [vmem:[%s2112_s26 + $0x18] sm:$0xff] %v166_v3   ;;  %v198_v11 = vld [vmem:[%s2107_s25 + $0xb0] sm:$0xff]   ;;  %v206_v13 = vld [vmem:[%s2107_s25 + $0xc0] sm:$0xff]   ;;  %v210_v14 = vld [vmem:[%s2107_s25 + $0xc8] sm:$0xff]  }
  0x15   : > { %171 = vst [vmem:[%s2112_s26 + $0x20] sm:$0xff] %v170_v4   ;;  %v214_v15 = vld [vmem:[%s2107_s25 + $0xd0] sm:$0xff]   ;;  %v218_v16 = vld [vmem:[%s2107_s25 + $0xd8] sm:$0xff]   ;;  %v222_v17 = vld [vmem:[%s2107_s25 + $0xe0] sm:$0xff]  }
  0x16   : > { %175 = vst [vmem:[%s2112_s26 + $0x28] sm:$0xff] %v174_v5   ;;  %v226_v18 = vld [vmem:[%s2107_s25 + $0xe8] sm:$0xff]   ;;  %v230_v19 = vld [vmem:[%s2107_s25 + $0xf0] sm:$0xff]   ;;  %v234_v20 = vld [vmem:[%s2107_s25 + $0xf8] sm:$0xff]  }
  0x17   : > { %179 = vst [vmem:[%s2112_s26 + $0x30] sm:$0xff] %v178_v6   ;;  %v238_v21 = vld [vmem:[%s2107_s25 + $0x100] sm:$0xff]   ;;  %v246_v23 = vld [vmem:[%s2107_s25 + $0x168] sm:$0xff]   ;;  %v250_v24 = vld [vmem:[%s2107_s25 + $0x170] sm:$0xff]  }
  0x18   : > { %183 = vst [vmem:[%s2112_s26 + $0x38] sm:$0xff] %v182_v7   ;;  %v242_v22 = vld [vmem:[%s2107_s25 + $0x160] sm:$0xff]   ;;  %v254_v25 = vld [vmem:[%s2107_s25 + $0x178] sm:$0xff]   ;;  %v262_v27 = vld [vmem:[%s2107_s25 + $0x188] sm:$0xff]  }
  0x19   : > { %187 = vst [vmem:[%s2112_s26 + $0x40] sm:$0xff] %v186_v8   ;;  %v258_v26 = vld [vmem:[%s2107_s25 + $0x180] sm:$0xff]   ;;  %v266_v28 = vld [vmem:[%s2107_s25 + $0x190] sm:$0xff]   ;;  %v270_v29 = vld [vmem:[%s2107_s25 + $0x198] sm:$0xff]  }
  0x1a   : > { %191 = vst [vmem:[%s2112_s26 + $0x48] sm:$0xff] %v190_v9   ;;  %v274_v30 = vld [vmem:[%s2107_s25 + $0x1a0] sm:$0xff]   ;;  %v278_v31 = vld [vmem:[%s2107_s25 + $0x1a8] sm:$0xff]   ;;  %v282_v32 = vld [vmem:[%s2107_s25 + $0x1b0] sm:$0xff]  }
  0x1b   : > { %195 = vst [vmem:[%s2112_s26 + $0x50] sm:$0xff] %v194_v10   ;;  %v286_v33 = vld [vmem:[%s2107_s25 + $0x210] sm:$0xff]   ;;  %v290_v34 = vld [vmem:[%s2107_s25 + $0x218] sm:$0xff]   ;;  %v294_v35 = vld [vmem:[%s2107_s25 + $0x220] sm:$0xff]  }
  0x1c   : > { %199 = vst [vmem:[%s2112_s26 + $0x58] sm:$0xff] %v198_v11   ;;  %v298_v36 = vld [vmem:[%s2107_s25 + $0x228] sm:$0xff]   ;;  %v302_v37 = vld [vmem:[%s2107_s25 + $0x230] sm:$0xff]   ;;  %v306_v38 = vld [vmem:[%s2107_s25 + $0x238] sm:$0xff]  }
  0x1d   : > { %203 = vst [vmem:[%s2112_s26 + $0x60] sm:$0xff] %v202_v12   ;;  %v310_v39 = vld [vmem:[%s2107_s25 + $0x240] sm:$0xff]   ;;  %v314_v40 = vld [vmem:[%s2107_s25 + $0x248] sm:$0xff]   ;;  %v318_v41 = vld [vmem:[%s2107_s25 + $0x250] sm:$0xff]  }
  0x1e   : > { %207 = vst [vmem:[%s2112_s26 + $0x68] sm:$0xff] %v206_v13   ;;  %v322_v42 = vld [vmem:[%s2107_s25 + $0x258] sm:$0xff]   ;;  %v326_v43 = vld [vmem:[%s2107_s25 + $0x260] sm:$0xff]  }
  0x1f   : > { %211 = vst [vmem:[%s2112_s26 + $0x70] sm:$0xff] %v210_v14  }
  0x20   : > { %215 = vst [vmem:[%s2112_s26 + $0x78] sm:$0xff] %v214_v15  }
  0x21   : > { %219 = vst [vmem:[%s2112_s26 + $0x80] sm:$0xff] %v218_v16  }
  0x22   : > { %223 = vst [vmem:[%s2112_s26 + $0x88] sm:$0xff] %v222_v17  }
  0x23   : > { %227 = vst [vmem:[%s2112_s26 + $0x90] sm:$0xff] %v226_v18  }
  0x24   : > { %231 = vst [vmem:[%s2112_s26 + $0x98] sm:$0xff] %v230_v19  }
  0x25   : > { %235 = vst [vmem:[%s2112_s26 + $0xa0] sm:$0xff] %v234_v20  }
  0x26   : > { %239 = vst [vmem:[%s2112_s26 + $0xa8] sm:$0xff] %v238_v21  }
  0x27   : > { %243 = vst [vmem:[%s2112_s26 + $0xb0] sm:$0xff] %v242_v22  }
  0x28   : > { %247 = vst [vmem:[%s2112_s26 + $0xb8] sm:$0xff] %v246_v23  }
  0x29   : > { %251 = vst [vmem:[%s2112_s26 + $0xc0] sm:$0xff] %v250_v24  }
  0x2a   : > { %255 = vst [vmem:[%s2112_s26 + $0xc8] sm:$0xff] %v254_v25  }
  0x2b   : > { %259 = vst [vmem:[%s2112_s26 + $0xd0] sm:$0xff] %v258_v26  }
  0x2c   : > { %263 = vst [vmem:[%s2112_s26 + $0xd8] sm:$0xff] %v262_v27  }
  0x2d   : > { %267 = vst [vmem:[%s2112_s26 + $0xe0] sm:$0xff] %v266_v28  }
  0x2e   : > { %271 = vst [vmem:[%s2112_s26 + $0xe8] sm:$0xff] %v270_v29  }
  0x2f   : > { %275 = vst [vmem:[%s2112_s26 + $0xf0] sm:$0xff] %v274_v30  }
  0x30   : > { %279 = vst [vmem:[%s2112_s26 + $0xf8] sm:$0xff] %v278_v31  }
  0x31   : > { %283 = vst [vmem:[%s2112_s26 + $0x100] sm:$0xff] %v282_v32  }
  0x32   : > { %287 = vst [vmem:[%s2112_s26 + $0x108] sm:$0xff] %v286_v33  }
  0x33   : > { %291 = vst [vmem:[%s2112_s26 + $0x110] sm:$0xff] %v290_v34  }
  0x34   : > { %295 = vst [vmem:[%s2112_s26 + $0x118] sm:$0xff] %v294_v35  }
  0x35   : > { %299 = vst [vmem:[%s2112_s26 + $0x120] sm:$0xff] %v298_v36  }
  0x36   : > { %303 = vst [vmem:[%s2112_s26 + $0x128] sm:$0xff] %v302_v37  }
  0x37   : > { %307 = vst [vmem:[%s2112_s26 + $0x130] sm:$0xff] %v306_v38  }
  0x38   : > { %311 = vst [vmem:[%s2112_s26 + $0x138] sm:$0xff] %v310_v39  }
  0x39   : > { %315 = vst [vmem:[%s2112_s26 + $0x140] sm:$0xff] %v314_v40  }
  0x3a   : > { %319 = vst [vmem:[%s2112_s26 + $0x148] sm:$0xff] %v318_v41  }
  0x3b   : > { %323 = vst [vmem:[%s2112_s26 + $0x150] sm:$0xff] %v322_v42  }
  0x3c   : > { %327 = vst [vmem:[%s2112_s26 + $0x158] sm:$0xff] %v326_v43  }
  0x3d PF: > { %p1594_p5 = scmp.ge.s32.totalorder %s2050_s14, 1  ;;  %p528_p6 = scmp.lt.s32.totalorder %s2050_s14, 3 }
  0x3f   : > { %p529_p7 = pnand %p1594_p5, %p528_p6 }
  0x40   : > { %s535_s4 = sand.u32 (!%p529_p7), 1, %s2042_s12   ;;  %s559_s9 = smul.u32 (!%p529_p7), 22, %s1589_s15 }
  0x41   : > { %532 = sbr.rel (%p529_p7) target bundleno = 401 (0x191), region = 69 }
  0x42   : > { %s1957_s5 = smul.u32 (!%p529_p7), 352, %s535_s4  ;;  %p560_p8 = scmp.lt.s32.totalorder (!%p529_p7), %s559_s9, 43 }
  0x44   : > { %s2208_s6 = scalar_lea.vmem (!%p529_p7), [#allocation2], %s1957_s5 }
  0x46   : > { %v1642_v44 = vld [vmem:[%s2387_s1] sm:$0xf]  ;;  %v1911_v45 = vld [vmem:[%s2387_s1] sm:$0x10]  ;;  %vm684_vm0 = vcmask 1043456   ;;  %vm685_vm1 = vcmask 1044480  }
  0x47   : > { %v1643_v46 = vor.u32 %v1911_v45, %v1642_v44  ;;  %v2052_v47 = vmov 65535   ;;  %v1912_v51 = vld [vmem:[%s2208_s6] sm:$0xff]  ;;  %v1923_v52 = vld [vmem:[%s2208_s6 + $0x58] sm:$0xff]  ;;  %vm650_vm2 = vcmask 72704   ;;  %v1934_v53 = vld [vmem:[%s2208_s6 + $0xb0] sm:$0xff]  ;;  %s2394_s9 = smov (!%p560_p8, %s559_s9), 43 }
  0x48   : > { %v686_v48 = vsel %vm684_vm0, 4294967295, %v2052_v47  ;;  %v1945_v54 = vld [vmem:[%s2208_s6 + $0x108] sm:$0xff]  ;;  %v1924_v56 = vld [vmem:[%s2208_s6 + $0x60] sm:$0xff]  ;;  %v1935_v57 = vld [vmem:[%s2208_s6 + $0xb8] sm:$0xff]  ;;  %s1595_s10 = sshll.u32 %s2394_s9, 3  ;;  %vm1504_vm3 = vcmask 130048  }
  0x49   : > { %v687_v49 = vsel %vm685_vm1, %v686_v48, 0  ;;  %v1913_v55 = vld [vmem:[%s2208_s6 + $0x8] sm:$0xff]  ;;  %v1946_v58 = vld [vmem:[%s2208_s6 + $0x110] sm:$0xff]  ;;  %v1936_v61 = vld [vmem:[%s2208_s6 + $0xc0] sm:$0xff]  ;;  %s2302_s14 = scalar_lea.vmem %s2389_s3, %s1595_s10 }
  0x4a   : > { %v689_v50 = vand.u32 %v1643_v46, %v687_v49  ;;  %v1914_v59 = vld [vmem:[%s2208_s6 + $0x10] sm:$0xff]  ;;  %v1925_v60 = vld [vmem:[%s2208_s6 + $0x68] sm:$0xff]  ;;  %v1947_v62 = vld [vmem:[%s2208_s6 + $0x118] sm:$0xff] }
  0x4b   : > { %v1915_v63 = vld [vmem:[%s2208_s6 + $0x18] sm:$0xff]  ;;  %v1926_v0 = vld [vmem:[%s2208_s6 + $0x70] sm:$0xff]  ;;  %v1937_v1 = vld [vmem:[%s2208_s6 + $0xc8] sm:$0xff] }
  0x4c   : > { %698 = vmatpush.bf16.msra.mxu0 %v689_v50  ;;  %873 = vmatpush.bf16.msra.mxu1 %v689_v50  ;;  %v1948_v2 = vld [vmem:[%s2208_s6 + $0x120] sm:$0xff]  ;;  %v1927_v4 = vld [vmem:[%s2208_s6 + $0x78] sm:$0xff]  ;;  %v1938_v5 = vld [vmem:[%s2208_s6 + $0xd0] sm:$0xff] }
  0x4d   : > { %1070 = vmatpush.bf16.msra.mxu2 %v689_v50  ;;  %1267 = vmatpush.bf16.msra.mxu3 %v689_v50  ;;  %v1916_v3 = vld [vmem:[%s2208_s6 + $0x20] sm:$0xff]  ;;  %v1949_v6 = vld [vmem:[%s2208_s6 + $0x128] sm:$0xff]  ;;  %v1939_v9 = vld [vmem:[%s2208_s6 + $0xd8] sm:$0xff] }
  0x4e   : > { %v1917_v7 = vld [vmem:[%s2208_s6 + $0x28] sm:$0xff]  ;;  %v1928_v8 = vld [vmem:[%s2208_s6 + $0x80] sm:$0xff]  ;;  %v1950_v10 = vld [vmem:[%s2208_s6 + $0x130] sm:$0xff] }
  0x4f   : > { %1644 = vmatmul.msk.bf16.vlgmr.msra.gmra.mxu0 %vm650_vm2, %v1912_v51  ;;  %1721 = vmatmul.msk.bf16.vlgmr.msra.gmra.mxu1 %vm650_vm2, %v1923_v52  ;;  %v1918_v11 = vld [vmem:[%s2208_s6 + $0x30] sm:$0xff]  ;;  %v1929_v12 = vld [vmem:[%s2208_s6 + $0x88] sm:$0xff]  ;;  %v1940_v13 = vld [vmem:[%s2208_s6 + $0xe0] sm:$0xff] }
  0x50   : > { %1798 = vmatmul.msk.bf16.vlgmr.msra.gmra.mxu2 %vm650_vm2, %v1934_v53  ;;  %1875 = vmatmul.msk.bf16.vlgmr.msra.gmra.mxu3 %vm650_vm2, %v1945_v54  ;;  %v1951_v14 = vld [vmem:[%s2208_s6 + $0x138] sm:$0xff]  ;;  %v1930_v16 = vld [vmem:[%s2208_s6 + $0x90] sm:$0xff]  ;;  %v1941_v17 = vld [vmem:[%s2208_s6 + $0xe8] sm:$0xff] }
  0x51   : > { %v1919_v15 = vld [vmem:[%s2208_s6 + $0x38] sm:$0xff]  ;;  %v1952_v18 = vld [vmem:[%s2208_s6 + $0x140] sm:$0xff]  ;;  %v1942_v23 = vld [vmem:[%s2208_s6 + $0xf0] sm:$0xff] }
  0x52   : > { %v1920_v19 = vld [vmem:[%s2208_s6 + $0x40] sm:$0xff]  ;;  %v1931_v20 = vld [vmem:[%s2208_s6 + $0x98] sm:$0xff]  ;;  %v1953_v24 = vld [vmem:[%s2208_s6 + $0x148] sm:$0xff] }
  0x53   : > { %v2285_v29 = vld [vmem:[%s2388_s2] ss:$0 sm:$0xff]  ;;  %v1921_v38 = vld [vmem:[%s2208_s6 + $0x48] sm:$0xff]  ;;  %v1943_v44 = vld [vmem:[%s2208_s6 + $0xf8] sm:$0xff] }
  0x54   : > { %v1932_v39 = vld [vmem:[%s2208_s6 + $0xa0] sm:$0xff]  ;;  %v1954_v45 = vld [vmem:[%s2208_s6 + $0x150] sm:$0xff] }
  0x5f   : > { %1645 = vmatmul.msk.bf16.gmra.mxu0 %vm650_vm2, %v1913_v55  ;;  %1722 = vmatmul.msk.bf16.gmra.mxu1 %vm650_vm2, %v1924_v56 }
  0x60   : > { %1799 = vmatmul.msk.bf16.gmra.mxu2 %vm650_vm2, %v1935_v57  ;;  %1876 = vmatmul.msk.bf16.gmra.mxu3 %vm650_vm2, %v1946_v58 }
  0x6f   : > { %1646 = vmatmul.msk.bf16.gmra.mxu0 %vm650_vm2, %v1914_v59  ;;  %1723 = vmatmul.msk.bf16.gmra.mxu1 %vm650_vm2, %v1925_v60 }
  0x70   : > { %1800 = vmatmul.msk.bf16.gmra.mxu2 %vm650_vm2, %v1936_v61  ;;  %1877 = vmatmul.msk.bf16.gmra.mxu3 %vm650_vm2, %v1947_v62 }
  0x7f   : > { %1647 = vmatmul.msk.bf16.gmra.mxu0 %vm650_vm2, %v1915_v63  ;;  %1724 = vmatmul.msk.bf16.gmra.mxu1 %vm650_vm2, %v1926_v0 }
  0x80   : > { %1801 = vmatmul.msk.bf16.gmra.mxu2 %vm650_vm2, %v1937_v1  ;;  %1878 = vmatmul.msk.bf16.gmra.mxu3 %vm650_vm2, %v1948_v2  ;;  %v1922_v1 = vld [vmem:[%s2208_s6 + $0x50] sm:$0xff]  ;;  %v1933_v2 = vld [vmem:[%s2208_s6 + $0xa8] sm:$0xff] }
  0x8f   : > { %1648 = vmatmul.msk.bf16.gmra.mxu0 %vm650_vm2, %v1916_v3  ;;  %1725 = vmatmul.msk.bf16.gmra.mxu1 %vm650_vm2, %v1927_v4 }
  0x90   : > { %1802 = vmatmul.msk.bf16.gmra.mxu2 %vm650_vm2, %v1938_v5  ;;  %1879 = vmatmul.msk.bf16.gmra.mxu3 %vm650_vm2, %v1949_v6 }
  0x9f   : > { %1649 = vmatmul.msk.bf16.gmra.mxu0 %vm650_vm2, %v1917_v7  ;;  %1726 = vmatmul.msk.bf16.gmra.mxu1 %vm650_vm2, %v1928_v8  ;;  %v1944_v8 = vld [vmem:[%s2208_s6 + $0x100] sm:$0xff] }
  0xa0   : > { %1803 = vmatmul.msk.bf16.gmra.mxu2 %vm650_vm2, %v1939_v9  ;;  %1880 = vmatmul.msk.bf16.gmra.mxu3 %vm650_vm2, %v1950_v10  ;;  %v1955_v9 = vld [vmem:[%s2208_s6 + $0x158] sm:$0xff] }
  0xaf   : > { %1650 = vmatmul.msk.bf16.gmra.mxu0 %vm650_vm2, %v1918_v11  ;;  %1727 = vmatmul.msk.bf16.gmra.mxu1 %vm650_vm2, %v1929_v12 }
  0xb0   : > { %1804 = vmatmul.msk.bf16.gmra.mxu2 %vm650_vm2, %v1940_v13  ;;  %1881 = vmatmul.msk.bf16.gmra.mxu3 %vm650_vm2, %v1951_v14 }
  0xbf   : > { %1651 = vmatmul.msk.bf16.gmra.mxu0 %vm650_vm2, %v1919_v15  ;;  %1728 = vmatmul.msk.bf16.gmra.mxu1 %vm650_vm2, %v1930_v16 }
  0xc0   : > { %1805 = vmatmul.msk.bf16.gmra.mxu2 %vm650_vm2, %v1941_v17  ;;  %1882 = vmatmul.msk.bf16.gmra.mxu3 %vm650_vm2, %v1952_v18 }
  0xcc   : > { %v700_v21 = vpop.f32.mrf.mxu0  ;;  %v875_v22 = vpop.f32.mrf.mxu1 }
  0xcd   : > { %v930_v25 = vmax.f32 %v700_v21, %v875_v22 }
  0xcf   : > { %1652 = vmatmul.msk.bf16.gmra.mxu0 %vm650_vm2, %v1920_v19  ;;  %1729 = vmatmul.msk.bf16.gmra.mxu1 %vm650_vm2, %v1931_v20 }
  0xd0   : > { %1806 = vmatmul.msk.bf16.gmra.mxu2 %vm650_vm2, %v1942_v23  ;;  %1883 = vmatmul.msk.bf16.gmra.mxu3 %vm650_vm2, %v1953_v24 }
  0xd3   : > { %v1072_v26 = vpop.f32.mrf.mxu2  ;;  %v1269_v27 = vpop.f32.mrf.mxu3 }
  0xd4   : > { %v1127_v28 = vmax.f32 %v930_v25, %v1072_v26  ;;  %v702_v30 = vpop.f32.mrf.mxu0  ;;  %v877_v31 = vpop.f32.mrf.mxu1 }
  0xd5   : > { %v931_v35 = vmax.f32 %v702_v30, %v877_v31 }
  0xd6   : > { %v1324_v32 = vmax.f32 %v1127_v28, %v1269_v27 }
  0xd8   : > { %v1350_v33 = vadd.f32 %v2285_v29, %v1324_v32 }
  0xda   : > { %v1394_v34 = vmin.f32 %v1350_v33, 0.0  ;;  %vm1372_vm4 = vcmp.gt.f32.partialorder %v1350_v33, 0.0 }
  0xdb   : > { %v1074_v36 = vpop.f32.mrf.mxu2  ;;  %v1271_v37 = vpop.f32.mrf.mxu3 }
  0xdc   : > { %v1416_v40 = vmul.f32 1.442695, %v1394_v34  ;;  %v1128_v41 = vmax.f32 %v931_v35, %v1074_v36  ;;  %v705_v42 = vpop.f32.mrf.mxu0  ;;  %v880_v43 = vpop.f32.mrf.mxu1 }
  0xdd   : > { %v932_v48 = vmax.f32 %v705_v42, %v880_v43 }
  0xde   : > { %1984 = vpow2.f32 %v1416_v40  ;;  %v1325_v46 = vmax.f32 %v1128_v41, %v1271_v37 }
  0xdf   : > { %1653 = vmatmul.msk.bf16.gmra.mxu0 %vm650_vm2, %v1921_v38  ;;  %1730 = vmatmul.msk.bf16.gmra.mxu1 %vm650_vm2, %v1932_v39 }
  0xe0   : > { %v1351_v47 = vadd.f32 %v2285_v29, %v1325_v46  ;;  %1807 = vmatmul.msk.bf16.gmra.mxu2 %vm650_vm2, %v1943_v44  ;;  %1884 = vmatmul.msk.bf16.gmra.mxu3 %vm650_vm2, %v1954_v45 }
  0xe2   : > { %v1395_v49 = vmin.f32 %v1351_v47, 0.0  ;;  %vm1373_vm5 = vcmp.gt.f32.partialorder %v1351_v47, 0.0 }
  0xe3   : > { %v1077_v50 = vpop.f32.mrf.mxu2  ;;  %v1274_v51 = vpop.f32.mrf.mxu3 }
  0xe4   : > { %v1985_v52 = vpop.eup %1984  ;;  %v1418_v53 = vmul.f32 1.442695, %v1395_v49  ;;  %v1129_v54 = vmax.f32 %v932_v48, %v1077_v50  ;;  %v707_v55 = vpop.f32.mrf.mxu0 }
  0xe5   : > { %v882_v56 = vpop.f32.mrf.mxu1  ;;  %v1886_v57 = vadd.f32 -1.0, %v1985_v52 }
  0xe6   : > { %1986 = vpow2.f32 %v1418_v53  ;;  %v1326_v58 = vmax.f32 %v1129_v54, %v1274_v51  ;;  %v933_v62 = vmax.f32 %v707_v55, %v882_v56 }
  0xe7   : > { %v1482_v59 = vsel %vm1372_vm4, %v1350_v33, %v1886_v57 }
  0xe8   : > { %1505 = vst.msk [vmem:[%s2302_s14] sm:$0xff] %vm1504_vm3, %v1482_v59  ;;  %v1352_v60 = vadd.f32 %v2285_v29, %v1326_v58 }
  0xea   : > { %v1396_v61 = vmin.f32 %v1352_v60, 0.0  ;;  %vm1374_vm6 = vcmp.gt.f32.partialorder %v1352_v60, 0.0 }
  0xeb   : > { %v1079_v63 = vpop.f32.mrf.mxu2  ;;  %v1276_v0 = vpop.f32.mrf.mxu3 }
  0xec   : > { %v1987_v3 = vpop.eup %1986  ;;  %v1420_v4 = vmul.f32 1.442695, %v1396_v61  ;;  %v1130_v5 = vmax.f32 %v933_v62, %v1079_v63  ;;  %v710_v6 = vpop.f32.mrf.mxu0 }
  0xed   : > { %v885_v7 = vpop.f32.mrf.mxu1  ;;  %v1887_v10 = vadd.f32 -1.0, %v1987_v3 }
  0xee   : > { %1988 = vpow2.f32 %v1420_v4  ;;  %v1327_v11 = vmax.f32 %v1130_v5, %v1276_v0  ;;  %v934_v14 = vmax.f32 %v710_v6, %v885_v7 }
  0xef   : > { %v1483_v12 = vsel %vm1373_vm5, %v1351_v47, %v1887_v10  ;;  %1654 = vmatmul.msk.bf16.gmra.mxu0 %vm650_vm2, %v1922_v1  ;;  %1731 = vmatmul.msk.bf16.gmra.mxu1 %vm650_vm2, %v1933_v2 }
  0xf0   : > { %1506 = vst.msk [vmem:[%s2302_s14 + $0x8] sm:$0xff] %vm1504_vm3, %v1483_v12  ;;  %v1353_v13 = vadd.f32 %v2285_v29, %v1327_v11  ;;  %1808 = vmatmul.msk.bf16.gmra.mxu2 %vm650_vm2, %v1944_v8  ;;  %1885 = vmatmul.msk.bf16.gmra.mxu3 %vm650_vm2, %v1955_v9 }
  0xf2   : > { %v1397_v15 = vmin.f32 %v1353_v13, 0.0  ;;  %vm1375_vm7 = vcmp.gt.f32.partialorder %v1353_v13, 0.0 }
  0xf3   : > { %v1082_v16 = vpop.f32.mrf.mxu2  ;;  %v1279_v17 = vpop.f32.mrf.mxu3 }
  0xf4   : > { %v1989_v18 = vpop.eup %1988  ;;  %v1422_v19 = vmul.f32 1.442695, %v1397_v15  ;;  %v1131_v20 = vmax.f32 %v934_v14, %v1082_v16  ;;  %v712_v21 = vpop.f32.mrf.mxu0 }
  0xf5   : > { %v887_v22 = vpop.f32.mrf.mxu1  ;;  %v1888_v23 = vadd.f32 -1.0, %v1989_v18 }
  0xf6   : > { %1990 = vpow2.f32 %v1422_v19  ;;  %v1328_v24 = vmax.f32 %v1131_v20, %v1279_v17  ;;  %v935_v28 = vmax.f32 %v712_v21, %v887_v22 }
  0xf7   : > { %v1484_v25 = vsel %vm1374_vm6, %v1352_v60, %v1888_v23 }
  0xf8   : > { %1507 = vst.msk [vmem:[%s2302_s14 + $0x10] sm:$0xff] %vm1504_vm3, %v1484_v25  ;;  %v1354_v26 = vadd.f32 %v2285_v29, %v1328_v24 }
  0xfa   : > { %v1398_v27 = vmin.f32 %v1354_v26, 0.0  ;;  %vm1376_vm8 = vcmp.gt.f32.partialorder %v1354_v26, 0.0 }
  0xfb   : > { %v1084_v30 = vpop.f32.mrf.mxu2  ;;  %v1281_v31 = vpop.f32.mrf.mxu3 }
  0xfc   : > { %v1991_v32 = vpop.eup %1990  ;;  %v1424_v33 = vmul.f32 1.442695, %v1398_v27  ;;  %v1132_v34 = vmax.f32 %v935_v28, %v1084_v30  ;;  %v715_v35 = vpop.f32.mrf.mxu0 }
  0xfd   : > { %v890_v36 = vpop.f32.mrf.mxu1  ;;  %v1889_v37 = vadd.f32 -1.0, %v1991_v32 }
  0xfe   : > { %1992 = vpow2.f32 %v1424_v33  ;;  %v1329_v38 = vmax.f32 %v1132_v34, %v1281_v31  ;;  %v936_v41 = vmax.f32 %v715_v35, %v890_v36 }
  0xff   : > { %v1485_v39 = vsel %vm1375_vm7, %v1353_v13, %v1889_v37 }
 0x100   : > { %1508 = vst.msk [vmem:[%s2302_s14 + $0x18] sm:$0xff] %vm1504_vm3, %v1485_v39  ;;  %v1355_v40 = vadd.f32 %v2285_v29, %v1329_v38 }
 0x102   : > { %v1399_v42 = vmin.f32 %v1355_v40, 0.0  ;;  %vm1377_vm9 = vcmp.gt.f32.partialorder %v1355_v40, 0.0 }
 0x103   : > { %v1087_v43 = vpop.f32.mrf.mxu2  ;;  %v1284_v44 = vpop.f32.mrf.mxu3 }
 0x104   : > { %v1993_v45 = vpop.eup %1992  ;;  %v1426_v46 = vmul.f32 1.442695, %v1399_v42  ;;  %v1133_v47 = vmax.f32 %v936_v41, %v1087_v43  ;;  %v717_v48 = vpop.f32.mrf.mxu0 }
 0x105   : > { %v892_v49 = vpop.f32.mrf.mxu1  ;;  %v1890_v50 = vadd.f32 -1.0, %v1993_v45 }
 0x106   : > { %1994 = vpow2.f32 %v1426_v46  ;;  %v1330_v51 = vmax.f32 %v1133_v47, %v1284_v44  ;;  %v937_v55 = vmax.f32 %v717_v48, %v892_v49 }
 0x107   : > { %v1486_v52 = vsel %vm1376_vm8, %v1354_v26, %v1890_v50 }
 0x108   : > { %1509 = vst.msk [vmem:[%s2302_s14 + $0x20] sm:$0xff] %vm1504_vm3, %v1486_v52  ;;  %v1356_v53 = vadd.f32 %v2285_v29, %v1330_v51 }
 0x10a   : > { %v1400_v54 = vmin.f32 %v1356_v53, 0.0  ;;  %vm1378_vm10 = vcmp.gt.f32.partialorder %v1356_v53, 0.0 }
 0x10b   : > { %v1089_v56 = vpop.f32.mrf.mxu2  ;;  %v1286_v57 = vpop.f32.mrf.mxu3 }
 0x10c   : > { %v1995_v58 = vpop.eup %1994  ;;  %v1428_v59 = vmul.f32 1.442695, %v1400_v54  ;;  %v1134_v60 = vmax.f32 %v937_v55, %v1089_v56  ;;  %v720_v61 = vpop.f32.mrf.mxu0 }
 0x10d   : > { %v895_v62 = vpop.f32.mrf.mxu1  ;;  %v1891_v63 = vadd.f32 -1.0, %v1995_v58 }
 0x10e   : > { %1996 = vpow2.f32 %v1428_v59  ;;  %v1331_v0 = vmax.f32 %v1134_v60, %v1286_v57  ;;  %v938_v3 = vmax.f32 %v720_v61, %v895_v62 }
 0x10f   : > { %v1487_v1 = vsel %vm1377_vm9, %v1355_v40, %v1891_v63 }
 0x110   : > { %1510 = vst.msk [vmem:[%s2302_s14 + $0x28] sm:$0xff] %vm1504_vm3, %v1487_v1  ;;  %v1357_v2 = vadd.f32 %v2285_v29, %v1331_v0 }
 0x112   : > { %v1401_v4 = vmin.f32 %v1357_v2, 0.0  ;;  %vm1379_vm11 = vcmp.gt.f32.partialorder %v1357_v2, 0.0 }
 0x113   : > { %v1092_v5 = vpop.f32.mrf.mxu2  ;;  %v1289_v6 = vpop.f32.mrf.mxu3 }
 0x114   : > { %v1997_v7 = vpop.eup %1996  ;;  %v1430_v8 = vmul.f32 1.442695, %v1401_v4  ;;  %v1135_v9 = vmax.f32 %v938_v3, %v1092_v5  ;;  %v722_v10 = vpop.f32.mrf.mxu0 }
 0x115   : > { %v897_v11 = vpop.f32.mrf.mxu1  ;;  %v1892_v12 = vadd.f32 -1.0, %v1997_v7 }
 0x116   : > { %1998 = vpow2.f32 %v1430_v8  ;;  %v1332_v13 = vmax.f32 %v1135_v9, %v1289_v6  ;;  %v939_v17 = vmax.f32 %v722_v10, %v897_v11 }
 0x117   : > { %v1488_v14 = vsel %vm1378_vm10, %v1356_v53, %v1892_v12 }
 0x118   : > { %1511 = vst.msk [vmem:[%s2302_s14 + $0x30] sm:$0xff] %vm1504_vm3, %v1488_v14  ;;  %v1358_v15 = vadd.f32 %v2285_v29, %v1332_v13 }
 0x11a   : > { %v1402_v16 = vmin.f32 %v1358_v15, 0.0  ;;  %vm1380_vm12 = vcmp.gt.f32.partialorder %v1358_v15, 0.0 }
 0x11b   : > { %v1094_v18 = vpop.f32.mrf.mxu2  ;;  %v1291_v19 = vpop.f32.mrf.mxu3 }
 0x11c   : > { %v1999_v20 = vpop.eup %1998  ;;  %v1432_v21 = vmul.f32 1.442695, %v1402_v16  ;;  %v1136_v22 = vmax.f32 %v939_v17, %v1094_v18  ;;  %v725_v23 = vpop.f32.mrf.mxu0 }
 0x11d   : > { %v900_v24 = vpop.f32.mrf.mxu1  ;;  %v1893_v25 = vadd.f32 -1.0, %v1999_v20 }
 0x11e   : > { %2000 = vpow2.f32 %v1432_v21  ;;  %v1333_v26 = vmax.f32 %v1136_v22, %v1291_v19  ;;  %v940_v30 = vmax.f32 %v725_v23, %v900_v24 }
 0x11f   : > { %v1489_v27 = vsel %vm1379_vm11, %v1357_v2, %v1893_v25 }
 0x120   : > { %1512 = vst.msk [vmem:[%s2302_s14 + $0x38] sm:$0xff] %vm1504_vm3, %v1489_v27  ;;  %v1359_v28 = vadd.f32 %v2285_v29, %v1333_v26 }
 0x122   : > { %v1403_v31 = vmin.f32 %v1359_v28, 0.0  ;;  %vm1381_vm13 = vcmp.gt.f32.partialorder %v1359_v28, 0.0 }
 0x123   : > { %v1097_v32 = vpop.f32.mrf.mxu2  ;;  %v1294_v33 = vpop.f32.mrf.mxu3 }
 0x124   : > { %v2001_v34 = vpop.eup %2000  ;;  %v1434_v35 = vmul.f32 1.442695, %v1403_v31  ;;  %v1137_v36 = vmax.f32 %v940_v30, %v1097_v32  ;;  %v727_v37 = vpop.f32.mrf.mxu0 }
 0x125   : > { %v902_v38 = vpop.f32.mrf.mxu1  ;;  %v1894_v39 = vadd.f32 -1.0, %v2001_v34 }
 0x126   : > { %2002 = vpow2.f32 %v1434_v35  ;;  %v1334_v40 = vmax.f32 %v1137_v36, %v1294_v33  ;;  %v941_v44 = vmax.f32 %v727_v37, %v902_v38 }
 0x127   : > { %v1490_v41 = vsel %vm1380_vm12, %v1358_v15, %v1894_v39 }
 0x128   : > { %1513 = vst.msk [vmem:[%s2302_s14 + $0x40] sm:$0xff] %vm1504_vm3, %v1490_v41  ;;  %v1360_v42 = vadd.f32 %v2285_v29, %v1334_v40 }
 0x12a   : > { %v1404_v43 = vmin.f32 %v1360_v42, 0.0  ;;  %vm1382_vm14 = vcmp.gt.f32.partialorder %v1360_v42, 0.0 }
 0x12b   : > { %v1099_v45 = vpop.f32.mrf.mxu2  ;;  %v1296_v46 = vpop.f32.mrf.mxu3 }
 0x12c   : > { %v2003_v47 = vpop.eup %2002  ;;  %v1436_v48 = vmul.f32 1.442695, %v1404_v43  ;;  %v1138_v49 = vmax.f32 %v941_v44, %v1099_v45  ;;  %v730_v50 = vpop.f32.mrf.mxu0 }
 0x12d   : > { %v905_v51 = vpop.f32.mrf.mxu1  ;;  %v1895_v52 = vadd.f32 -1.0, %v2003_v47 }
 0x12e   : > { %2004 = vpow2.f32 %v1436_v48  ;;  %v1335_v53 = vmax.f32 %v1138_v49, %v1296_v46  ;;  %v942_v56 = vmax.f32 %v730_v50, %v905_v51 }
 0x12f   : > { %v1491_v54 = vsel %vm1381_vm13, %v1359_v28, %v1895_v52 }
 0x130   : > { %1514 = vst.msk [vmem:[%s2302_s14 + $0x48] sm:$0xff] %vm1504_vm3, %v1491_v54  ;;  %v1361_v55 = vadd.f32 %v2285_v29, %v1335_v53 }
 0x132   : > { %v1405_v57 = vmin.f32 %v1361_v55, 0.0  ;;  %vm1383_vm15 = vcmp.gt.f32.partialorder %v1361_v55, 0.0 }
 0x133   : > { %v1102_v58 = vpop.f32.mrf.mxu2  ;;  %v1299_v59 = vpop.f32.mrf.mxu3 }
 0x134   : > { %v2005_v60 = vpop.eup %2004  ;;  %v1438_v61 = vmul.f32 1.442695, %v1405_v57  ;;  %v1139_v62 = vmax.f32 %v942_v56, %v1102_v58  ;;  %v732_v63 = vpop.f32.mrf.mxu0 }
 0x135   : > { %v907_v0 = vpop.f32.mrf.mxu1  ;;  %v1896_v1 = vadd.f32 -1.0, %v2005_v60 }
 0x136   : > { %2006 = vpow2.f32 %v1438_v61  ;;  %v1336_v2 = vmax.f32 %v1139_v62, %v1299_v59  ;;  %v943_v6 = vmax.f32 %v732_v63, %v907_v0 }
 0x137   : > { %v1492_v3 = vsel %vm1382_vm14, %v1360_v42, %v1896_v1 }
 0x138   : > { %1515 = vst.msk [vmem:[%s2302_s14 + $0x50] sm:$0xff] %vm1504_vm3, %v1492_v3  ;;  %v1362_v4 = vadd.f32 %v2285_v29, %v1336_v2 }
 0x13a   : > { %v1406_v5 = vmin.f32 %v1362_v4, 0.0  ;;  %vm1384_vm0 = vcmp.gt.f32.partialorder %v1362_v4, 0.0 }
 0x13b   : > { %v1104_v7 = vpop.f32.mrf.mxu2  ;;  %v1301_v8 = vpop.f32.mrf.mxu3 }
 0x13c   : > { %v2007_v9 = vpop.eup %2006  ;;  %v1440_v10 = vmul.f32 1.442695, %v1406_v5  ;;  %v1140_v11 = vmax.f32 %v943_v6, %v1104_v7  ;;  %v735_v12 = vpop.f32.mrf.mxu0 }
 0x13d   : > { %v910_v13 = vpop.f32.mrf.mxu1  ;;  %v1897_v14 = vadd.f32 -1.0, %v2007_v9 }
 0x13e   : > { %2008 = vpow2.f32 %v1440_v10  ;;  %v1337_v15 = vmax.f32 %v1140_v11, %v1301_v8  ;;  %v944_v18 = vmax.f32 %v735_v12, %v910_v13 }
 0x13f   : > { %v1493_v16 = vsel %vm1383_vm15, %v1361_v55, %v1897_v14 }
 0x140   : > { %1516 = vst.msk [vmem:[%s2302_s14 + $0x58] sm:$0xff] %vm1504_vm3, %v1493_v16  ;;  %v1363_v17 = vadd.f32 %v2285_v29, %v1337_v15 }
 0x142   : > { %v1407_v19 = vmin.f32 %v1363_v17, 0.0  ;;  %vm1385_vm1 = vcmp.gt.f32.partialorder %v1363_v17, 0.0 }
 0x143   : > { %v1107_v20 = vpop.f32.mrf.mxu2  ;;  %v1304_v21 = vpop.f32.mrf.mxu3 }
 0x144   : > { %v2009_v22 = vpop.eup %2008  ;;  %v1442_v23 = vmul.f32 1.442695, %v1407_v19  ;;  %v1141_v24 = vmax.f32 %v944_v18, %v1107_v20  ;;  %v737_v25 = vpop.f32.mrf.mxu0 }
 0x145   : > { %v912_v26 = vpop.f32.mrf.mxu1  ;;  %v1898_v27 = vadd.f32 -1.0, %v2009_v22 }
 0x146   : > { %2010 = vpow2.f32 %v1442_v23  ;;  %v1338_v28 = vmax.f32 %v1141_v24, %v1304_v21  ;;  %v945_v33 = vmax.f32 %v737_v25, %v912_v26 }
 0x147   : > { %v1494_v30 = vsel %vm1384_vm0, %v1362_v4, %v1898_v27 }
 0x148   : > { %1517 = vst.msk [vmem:[%s2302_s14 + $0x60] sm:$0xff] %vm1504_vm3, %v1494_v30  ;;  %v1364_v31 = vadd.f32 %v2285_v29, %v1338_v28 }
 0x14a   : > { %v1408_v32 = vmin.f32 %v1364_v31, 0.0  ;;  %vm1386_vm2 = vcmp.gt.f32.partialorder %v1364_v31, 0.0 }
 0x14b   : > { %v1109_v34 = vpop.f32.mrf.mxu2  ;;  %v1306_v35 = vpop.f32.mrf.mxu3 }
 0x14c   : > { %v2011_v36 = vpop.eup %2010  ;;  %v1444_v37 = vmul.f32 1.442695, %v1408_v32  ;;  %v1142_v38 = vmax.f32 %v945_v33, %v1109_v34  ;;  %v740_v39 = vpop.f32.mrf.mxu0 }
 0x14d   : > { %v915_v40 = vpop.f32.mrf.mxu1  ;;  %v1899_v41 = vadd.f32 -1.0, %v2011_v36 }
 0x14e   : > { %2012 = vpow2.f32 %v1444_v37  ;;  %v1339_v42 = vmax.f32 %v1142_v38, %v1306_v35  ;;  %v946_v45 = vmax.f32 %v740_v39, %v915_v40 }
 0x14f   : > { %v1495_v43 = vsel %vm1385_vm1, %v1363_v17, %v1899_v41 }
 0x150   : > { %1518 = vst.msk [vmem:[%s2302_s14 + $0x68] sm:$0xff] %vm1504_vm3, %v1495_v43  ;;  %v1365_v44 = vadd.f32 %v2285_v29, %v1339_v42 }
 0x152   : > { %v1409_v46 = vmin.f32 %v1365_v44, 0.0  ;;  %vm1387_vm4 = vcmp.gt.f32.partialorder %v1365_v44, 0.0 }
 0x153   : > { %v1112_v47 = vpop.f32.mrf.mxu2  ;;  %v1309_v48 = vpop.f32.mrf.mxu3 }
 0x154   : > { %v2013_v49 = vpop.eup %2012  ;;  %v1446_v50 = vmul.f32 1.442695, %v1409_v46  ;;  %v1143_v51 = vmax.f32 %v946_v45, %v1112_v47  ;;  %v742_v52 = vpop.f32.mrf.mxu0 }
 0x155   : > { %v917_v53 = vpop.f32.mrf.mxu1  ;;  %v1900_v54 = vadd.f32 -1.0, %v2013_v49 }
 0x156   : > { %2014 = vpow2.f32 %v1446_v50  ;;  %v1340_v55 = vmax.f32 %v1143_v51, %v1309_v48  ;;  %v947_v59 = vmax.f32 %v742_v52, %v917_v53 }
 0x157   : > { %v1496_v56 = vsel %vm1386_vm2, %v1364_v31, %v1900_v54 }
 0x158   : > { %1519 = vst.msk [vmem:[%s2302_s14 + $0x70] sm:$0xff] %vm1504_vm3, %v1496_v56  ;;  %v1366_v57 = vadd.f32 %v2285_v29, %v1340_v55 }
 0x15a   : > { %v1410_v58 = vmin.f32 %v1366_v57, 0.0  ;;  %vm1388_vm5 = vcmp.gt.f32.partialorder %v1366_v57, 0.0 }
 0x15b   : > { %v1114_v60 = vpop.f32.mrf.mxu2  ;;  %v1311_v61 = vpop.f32.mrf.mxu3 }
 0x15c   : > { %v2015_v62 = vpop.eup %2014  ;;  %v1448_v63 = vmul.f32 1.442695, %v1410_v58  ;;  %v1144_v0 = vmax.f32 %v947_v59, %v1114_v60  ;;  %v745_v1 = vpop.f32.mrf.mxu0 }
 0x15d   : > { %v920_v2 = vpop.f32.mrf.mxu1  ;;  %v1901_v3 = vadd.f32 -1.0, %v2015_v62 }
 0x15e   : > { %2016 = vpow2.f32 %v1448_v63  ;;  %v1341_v4 = vmax.f32 %v1144_v0, %v1311_v61  ;;  %v948_v7 = vmax.f32 %v745_v1, %v920_v2 }
 0x15f   : > { %v1497_v5 = vsel %vm1387_vm4, %v1365_v44, %v1901_v3 }
 0x160   : > { %1520 = vst.msk [vmem:[%s2302_s14 + $0x78] sm:$0xff] %vm1504_vm3, %v1497_v5  ;;  %v1367_v6 = vadd.f32 %v2285_v29, %v1341_v4 }
 0x162   : > { %v1411_v8 = vmin.f32 %v1367_v6, 0.0  ;;  %vm1389_vm6 = vcmp.gt.f32.partialorder %v1367_v6, 0.0 }
 0x163   : > { %v1117_v9 = vpop.f32.mrf.mxu2  ;;  %v1314_v10 = vpop.f32.mrf.mxu3 }
 0x164   : > { %v2017_v11 = vpop.eup %2016  ;;  %v1450_v12 = vmul.f32 1.442695, %v1411_v8  ;;  %v1145_v13 = vmax.f32 %v948_v7, %v1117_v9  ;;  %v747_v14 = vpop.f32.mrf.mxu0 }
 0x165   : > { %v922_v15 = vpop.f32.mrf.mxu1  ;;  %v1902_v16 = vadd.f32 -1.0, %v2017_v11 }
 0x166   : > { %2018 = vpow2.f32 %v1450_v12  ;;  %v1342_v17 = vmax.f32 %v1145_v13, %v1314_v10  ;;  %v949_v21 = vmax.f32 %v747_v14, %v922_v15 }
 0x167   : > { %v1498_v18 = vsel %vm1388_vm5, %v1366_v57, %v1902_v16 }
 0x168   : > { %1521 = vst.msk [vmem:[%s2302_s14 + $0x80] sm:$0xff] %vm1504_vm3, %v1498_v18  ;;  %v1368_v19 = vadd.f32 %v2285_v29, %v1342_v17 }
 0x16a   : > { %v1412_v20 = vmin.f32 %v1368_v19, 0.0  ;;  %vm1390_vm7 = vcmp.gt.f32.partialorder %v1368_v19, 0.0 }
 0x16b   : > { %v1119_v22 = vpop.f32.mrf.mxu2  ;;  %v1316_v23 = vpop.f32.mrf.mxu3 }
 0x16c   : > { %v2019_v24 = vpop.eup %2018  ;;  %v1452_v25 = vmul.f32 1.442695, %v1412_v20  ;;  %v1146_v26 = vmax.f32 %v949_v21, %v1119_v22  ;;  %v750_v28 = vpop.f32.mrf.mxu0 }
 0x16d   : > { %v1903_v27 = vadd.f32 -1.0, %v2019_v24  ;;  %v925_v30 = vpop.f32.mrf.mxu1 }
 0x16e   : > { %2020 = vpow2.f32 %v1452_v25  ;;  %v1343_v31 = vmax.f32 %v1146_v26, %v1316_v23  ;;  %v950_v34 = vmax.f32 %v750_v28, %v925_v30 }
 0x16f   : > { %v1499_v32 = vsel %vm1389_vm6, %v1367_v6, %v1903_v27 }
 0x170   : > { %1522 = vst.msk [vmem:[%s2302_s14 + $0x88] sm:$0xff] %vm1504_vm3, %v1499_v32  ;;  %v1369_v33 = vadd.f32 %v2285_v29, %v1343_v31 }
 0x172   : > { %v1413_v35 = vmin.f32 %v1369_v33, 0.0  ;;  %vm1391_vm8 = vcmp.gt.f32.partialorder %v1369_v33, 0.0 }
 0x173   : > { %v1122_v36 = vpop.f32.mrf.mxu2  ;;  %v1319_v37 = vpop.f32.mrf.mxu3 }
 0x174   : > { %v2021_v38 = vpop.eup %2020  ;;  %v1454_v39 = vmul.f32 1.442695, %v1413_v35  ;;  %v1147_v40 = vmax.f32 %v950_v34, %v1122_v36  ;;  %v752_v44 = vpop.f32.mrf.mxu0 }
 0x175   : > { %v1904_v41 = vadd.f32 -1.0, %v2021_v38  ;;  %v927_v45 = vpop.f32.mrf.mxu1 }
 0x176   : > { %2022 = vpow2.f32 %v1454_v39  ;;  %v1344_v42 = vmax.f32 %v1147_v40, %v1319_v37  ;;  %v951_v48 = vmax.f32 %v752_v44, %v927_v45 }
 0x177   : > { %v1500_v43 = vsel %vm1390_vm7, %v1368_v19, %v1904_v41 }
 0x178   : > { %1523 = vst.msk [vmem:[%s2302_s14 + $0x90] sm:$0xff] %vm1504_vm3, %v1500_v43  ;;  %v1370_v46 = vadd.f32 %v2285_v29, %v1344_v42 }
 0x17a   : > { %v1414_v47 = vmin.f32 %v1370_v46, 0.0  ;;  %vm1392_vm9 = vcmp.gt.f32.partialorder %v1370_v46, 0.0 }
 0x17b   : > { %v1124_v49 = vpop.f32.mrf.mxu2  ;;  %v1321_v54 = vpop.f32.mrf.mxu3 }
 0x17c   : > { %v2023_v50 = vpop.eup %2022  ;;  %v1456_v51 = vmul.f32 1.442695, %v1414_v47  ;;  %v1148_v52 = vmax.f32 %v951_v48, %v1124_v49 }
 0x17d   : > { %v1905_v53 = vadd.f32 -1.0, %v2023_v50 }
 0x17e   : > { %2024 = vpow2.f32 %v1456_v51  ;;  %v1345_v55 = vmax.f32 %v1148_v52, %v1321_v54 }
 0x17f   : > { %v1501_v56 = vsel %vm1391_vm8, %v1369_v33, %v1905_v53 }
 0x180   : > { %1524 = vst.msk [vmem:[%s2302_s14 + $0x98] sm:$0xff] %vm1504_vm3, %v1501_v56  ;;  %v1371_v57 = vadd.f32 %v2285_v29, %v1345_v55 }
 0x182   : > { %v1415_v58 = vmin.f32 %v1371_v57, 0.0  ;;  %vm1393_vm10 = vcmp.gt.f32.partialorder %v1371_v57, 0.0 }
 0x184   : > { %v2025_v59 = vpop.eup %2024  ;;  %v1458_v60 = vmul.f32 1.442695, %v1415_v58 }
 0x185   : > { %v1906_v61 = vadd.f32 -1.0, %v2025_v59 }
 0x186   : > { %2026 = vpow2.f32 %v1458_v60 }
 0x187   : > { %v1502_v62 = vsel %vm1392_vm9, %v1370_v46, %v1906_v61 }
 0x188   : > { %1525 = vst.msk [vmem:[%s2302_s14 + $0xa0] sm:$0xff] %vm1504_vm3, %v1502_v62 }
 0x18c   : > { %v2027_v63 = vpop.eup %2026 }
 0x18d   : > { %v1907_v0 = vadd.f32 -1.0, %v2027_v63 }
 0x18f   : > { %v1503_v1 = vsel %vm1393_vm10, %v1371_v57, %v1907_v0 }
 0x190   : > { %1526 = vst.msk [vmem:[%s2302_s14 + $0xa8] sm:$0xff] %vm1504_vm3, %v1503_v1 }
 0x191 PF: > { %p10_p9 = scmp.ge.s32.totalorder %s2090_s16, 4   ;;  %s2390_s12 = smov %s2046_s13 }
 0x192   : > { %s2391_s13 = smov %s2099_s19  ;;  %s2392_s14 = smov %s2090_s16 }
 0x193   :  { %12 = sbr.rel (!%p10_p9) target bundleno = 2 (0x2), region = 111 }

// kernel: ownnet_forward.4
= control target key start
LH: loop header
LB: loop body
LE: loop exit
PB: predicated region body
PF: predicated region fallthrough
CT: control target
= control target key end

     0   :  { %vm112_vm0 = vcmask 130048   ;;  %vm404_vm1 = vcmask 261120   ;;  %s802_s1 = inlined_call_operand.vmem [shape: bf16[144,32], index: 1, kind: input, shape index: {}]   ;;  %s803_s0 = inlined_call_operand.vmem [shape: bf16[4,32,144], index: 0, kind: input, shape index: {}]   ;;  %s804_s2 = inlined_call_operand.vmem [shape: f32[1,32], index: 2, kind: input, shape index: {}]   ;;  %s805_s3 = inlined_call_operand.vmem [shape: f32[32,32], index: 3, kind: output, shape index: {0}]   ;;  %s806_s4 = inlined_call_operand.vmem [shape: f32[8,32], index: 4, kind: output, shape index: {1}]  }
   0x1   :  { %v623_v0 = vld [vmem:[%s802_s1 + $0x38] sm:$0xff]  ;;  %v628_v1 = vld [vmem:[%s802_s1 + $0x40] sm:$0xff]  ;;  %v429_v3 = vld [vmem:[%s803_s0 + $0x8] sm:$0xf0] }
   0x2   :  { %v559_v2 = vld [vmem:[%s803_s0 + $0x4] sm:$0xf]  ;;  %v487_v5 = vld [vmem:[%s803_s0 + $0x28] sm:$0xf0]  ;;  %119 = vmatpush.bf16.msra.mxu0 %v623_v0  ;;  %145 = vmatpush.bf16.msra.mxu1 %v628_v1  ;;  %v647_v8 = vld [vmem:[%s802_s1 + $0x30] sm:$0xff] }
   0x3   :  { %v563_v4 = vld [vmem:[%s803_s0 + $0x24] sm:$0xf]  ;;  %v432_v6 = vor.u32 %v559_v2, %v429_v3  ;;  %186 = vmatpush.bf16.msra.mxu2 %v623_v0  ;;  %212 = vmatpush.bf16.msra.mxu3 %v628_v1  ;;  %v555_v9 = vld [vmem:[%s802_s1 + $0x28] sm:$0xff]  ;;  %v668_v11 = vld [vmem:[%s802_s1 + $0x18] sm:$0xff] }
   0x4   :  { %v490_v7 = vor.u32 %v563_v4, %v487_v5  ;;  %v554_v10 = vld [vmem:[%s802_s1 + $0x20] sm:$0xff]  ;;  %v561_v12 = vld [vmem:[%s803_s0 + $0x14] sm:$0xf]  ;;  %v437_v13 = vld [vmem:[%s803_s0 + $0x18] sm:$0xf0] }
   0x5   :  { %477 = vmatmul.msk.bf16.vlgmr.msra.gmra.mxu1 %vm112_vm0, %v432_v6  ;;  %v565_v14 = vld [vmem:[%s803_s0 + $0x34] sm:$0xf]  ;;  %v495_v15 = vld [vmem:[%s803_s0 + $0x38] sm:$0xf0]  ;;  %v440_v16 = vor.u32 %v561_v12, %v437_v13  ;;  %v551_v19 = vld [vmem:[%s802_s1 + $0x8] sm:$0xff] }
   0x6   :  { %257 = vmatpush.bf16.msrb.mxu1 %v623_v0  ;;  %499 = vmatmul.msk.bf16.vlgmr.msra.gmra.mxu3 %vm112_vm0, %v490_v7  ;;  %v498_v17 = vor.u32 %v565_v14, %v495_v15  ;;  %v552_v18 = vld [vmem:[%s802_s1 + $0x10] sm:$0xff]  ;;  %v550_v20 = vld [vmem:[%s802_s1] sm:$0xff]  ;;  %v560_v22 = vld [vmem:[%s803_s0 + $0x4] sm:$0xf0] }
   0x7   :  { %283 = vmatpush.bf16.msrb.mxu3 %v628_v1  ;;  %120 = vmatpush.bf16.msra.mxu0 %v647_v8  ;;  %v427_v21 = vld [vmem:[%s803_s0] sm:$0xf]  ;;  %v564_v24 = vld [vmem:[%s803_s0 + $0x24] sm:$0xf0]  ;;  %v567_v29 = vld [vmem:[%s803_s0 + $0x44] sm:$0xf] }
   0x8   :  { %187 = vmatpush.bf16.msra.mxu2 %v647_v8  ;;  %v485_v23 = vld [vmem:[%s803_s0 + $0x20] sm:$0xf]  ;;  %v428_v25 = vor.u32 %v560_v22, %v427_v21  ;;  %v568_v28 = vld [vmem:[%s803_s0 + $0x44] sm:$0xf0]  ;;  %v509_v30 = vld [vmem:[%s803_s0 + $0x48] sm:$0xf0] }
   0x9   :  { %v486_v26 = vor.u32 %v564_v24, %v485_v23  ;;  %v507_v27 = vld [vmem:[%s803_s0 + $0x40] sm:$0xf]  ;;  %v512_v32 = vor.u32 %v567_v29, %v509_v30  ;;  %v435_v33 = vld [vmem:[%s803_s0 + $0x10] sm:$0xf]  ;;  %v562_v34 = vld [vmem:[%s803_s0 + $0x14] sm:$0xf0] }
   0xa   :  { %258 = vmatpush.bf16.msrb.mxu1 %v647_v8  ;;  %v508_v31 = vor.u32 %v568_v28, %v507_v27  ;;  %v493_v35 = vld [vmem:[%s803_s0 + $0x30] sm:$0xf]  ;;  %v566_v36 = vld [vmem:[%s803_s0 + $0x34] sm:$0xf0]  ;;  %v436_v37 = vor.u32 %v562_v34, %v435_v33  ;;  %v569_v41 = vld [vmem:[%s803_s0 + $0x54] sm:$0xf] }
   0xb   :  { %583 = vmatpush.bf16.msra.mxu3 %v628_v1  ;;  %121 = vmatpush.bf16.msra.mxu0 %v555_v9  ;;  %v494_v38 = vor.u32 %v566_v36, %v493_v35  ;;  %v515_v39 = vld [vmem:[%s803_s0 + $0x50] sm:$0xf]  ;;  %v570_v40 = vld [vmem:[%s803_s0 + $0x54] sm:$0xf0]  ;;  %v517_v42 = vld [vmem:[%s803_s0 + $0x58] sm:$0xf0] }
   0xc   :  { %188 = vmatpush.bf16.msra.mxu2 %v555_v9  ;;  %v516_v43 = vor.u32 %v570_v40, %v515_v39  ;;  %v520_v44 = vor.u32 %v569_v41, %v517_v42  ;;  %v529_v45 = vld [vmem:[%s803_s0 + $0x60] sm:$0xf]  ;;  %v572_v46 = vld [vmem:[%s803_s0 + $0x64] sm:$0xf0]  ;;  %v571_v47 = vld [vmem:[%s803_s0 + $0x64] sm:$0xf] }
   0xd   :  { %v531_v48 = vld [vmem:[%s803_s0 + $0x68] sm:$0xf0]  ;;  %v530_v49 = vor.u32 %v572_v46, %v529_v45  ;;  %v537_v51 = vld [vmem:[%s803_s0 + $0x70] sm:$0xf]  ;;  %v574_v52 = vld [vmem:[%s803_s0 + $0x74] sm:$0xf0] }
   0xe   :  { %259 = vmatpush.bf16.msrb.mxu1 %v555_v9  ;;  %v534_v50 = vor.u32 %v571_v47, %v531_v48  ;;  %v573_v53 = vld [vmem:[%s803_s0 + $0x74] sm:$0xf]  ;;  %v539_v54 = vld [vmem:[%s803_s0 + $0x78] sm:$0xf0]  ;;  %v538_v55 = vor.u32 %v574_v52, %v537_v51  ;;  %v584_v28 = vld [vmem:[%s804_s2] ss:$0 sm:$0xff] }
   0xf   :  { %122 = vmatpush.bf16.msra.mxu0 %v554_v10  ;;  %v542_v56 = vor.u32 %v573_v53, %v539_v54 }
  0x10   :  { %189 = vmatpush.bf16.msra.mxu2 %v554_v10 }
  0x12   :  { %260 = vmatpush.bf16.msrb.mxu1 %v554_v10 }
  0x13   :  { %123 = vmatpush.bf16.msra.mxu0 %v668_v11 }
  0x14   :  { %190 = vmatpush.bf16.msra.mxu2 %v668_v11 }
  0x15   :  { %478 = vmatmul.msk.bf16.gmra.mxu1 %vm112_vm0, %v440_v16 }
  0x16   :  { %261 = vmatpush.bf16.msrb.mxu1 %v668_v11  ;;  %500 = vmatmul.msk.bf16.gmra.mxu3 %vm112_vm0, %v498_v17 }
  0x17   :  { %124 = vmatpush.bf16.msra.mxu0 %v552_v18 }
  0x18   :  { %191 = vmatpush.bf16.msra.mxu2 %v552_v18 }
  0x1a   :  { %262 = vmatpush.bf16.msrb.mxu1 %v552_v18 }
  0x1b   :  { %125 = vmatpush.bf16.msra.mxu0 %v551_v19 }
  0x1c   :  { %192 = vmatpush.bf16.msra.mxu2 %v551_v19 }
  0x1e   :  { %263 = vmatpush.bf16.msrb.mxu1 %v551_v19 }
  0x1f   :  { %126 = vmatpush.bf16.msra.mxu0 %v550_v20 }
  0x20   :  { %193 = vmatpush.bf16.msra.mxu2 %v550_v20 }
  0x22   :  { %264 = vmatpush.bf16.msrb.mxu1 %v550_v20  ;;  %127 = vmatmul.bf16.vlgmr.msra.gmra.mxu0 %v428_v25 }
  0x23   :  { %328 = vmatpush.bf16.msrb.mxu0 %v623_v0  ;;  %194 = vmatmul.bf16.vlgmr.msra.gmra.mxu2 %v486_v26 }
  0x24   :  { %354 = vmatpush.bf16.msrb.mxu2 %v628_v1 }
  0x25   :  { %265 = vmatmul.bf16.vlgmr.msrb.gmra.mxu1 %v508_v31 }
  0x26   :  { %575 = vmatpush.bf16.msra.mxu1 %v623_v0  ;;  %521 = vmatmul.msk.bf16.vlgmr.msrb.gmra.mxu3 %vm112_vm0, %v512_v32 }
  0x27   :  { %329 = vmatpush.bf16.msrb.mxu0 %v647_v8 }
  0x2a   :  { %576 = vmatpush.bf16.msra.mxu1 %v647_v8 }
  0x2b   :  { %330 = vmatpush.bf16.msrb.mxu0 %v555_v9 }
  0x2e   :  { %577 = vmatpush.bf16.msra.mxu1 %v555_v9 }
  0x2f   :  { %331 = vmatpush.bf16.msrb.mxu0 %v554_v10 }
  0x32   :  { %578 = vmatpush.bf16.msra.mxu1 %v554_v10  ;;  %132 = vmatmul.bf16.gmra.mxu0 %v436_v37 }
  0x33   :  { %332 = vmatpush.bf16.msrb.mxu0 %v668_v11  ;;  %199 = vmatmul.bf16.gmra.mxu2 %v494_v38 }
  0x35   :  { %270 = vmatmul.bf16.gmra.mxu1 %v516_v43 }
  0x36   :  { %579 = vmatpush.bf16.msra.mxu1 %v668_v11  ;;  %522 = vmatmul.msk.bf16.gmra.mxu3 %vm112_vm0, %v520_v44 }
  0x37   :  { %333 = vmatpush.bf16.msrb.mxu0 %v552_v18 }
  0x3a   :  { %580 = vmatpush.bf16.msra.mxu1 %v552_v18 }
  0x3b   :  { %334 = vmatpush.bf16.msrb.mxu0 %v551_v19 }
  0x3e   :  { %581 = vmatpush.bf16.msra.mxu1 %v551_v19 }
  0x3f   :  { %335 = vmatpush.bf16.msrb.mxu0 %v550_v20 }
  0x42   :  { %582 = vmatpush.bf16.msra.mxu1 %v550_v20  ;;  %336 = vmatmul.bf16.vlgmr.msrb.gmra.mxu0 %v530_v49 }
  0x43   :  { %543 = vmatmul.msk.bf16.vlgmr.msrb.gmra.mxu2 %vm112_vm0, %v534_v50 }
  0x45   :  { %341 = vmatmul.bf16.vlgmr.msra.gmra.mxu1 %v538_v55 }
  0x46   :  { %544 = vmatmul.msk.bf16.vlgmr.msra.gmra.mxu3 %vm112_vm0, %v542_v56 }
  0x82   :  { %v147_v57 = vpop.f32.mrf.mxu1 }
  0x89   :  { %v214_v58 = vpop.f32.mrf.mxu3 }
  0x8a   :  { %v149_v59 = vpop.f32.mrf.mxu1 }
  0x91   :  { %v216_v60 = vpop.f32.mrf.mxu3 }
  0x92   :  { %v152_v61 = vpop.f32.mrf.mxu1 }
  0x99   :  { %v219_v62 = vpop.f32.mrf.mxu3 }
  0x9a   :  { %v154_v63 = vpop.f32.mrf.mxu1 }
  0x9f   :  { %v128_v0 = vpop.f32.mrf.mxu0 }
  0xa0   :  { %v148_v18 = vadd.f32 %v147_v57, %v128_v0 }
  0xa1   :  { %v221_v1 = vpop.f32.mrf.mxu3 }
  0xa2   :  { %v266_v2 = vpop.f32.mrf.mxu1 }
  0xa6   :  { %v195_v3 = vpop.f32.mrf.mxu2 }
  0xa7   :  { %v130_v4 = vpop.f32.mrf.mxu0  ;;  %v215_v16 = vadd.f32 %v214_v58, %v195_v3 }
  0xa8   :  { %v150_v33 = vadd.f32 %v149_v59, %v130_v4 }
  0xa9   :  { %v285_v5 = vpop.f32.mrf.mxu3  ;;  %v224_v21 = vmax.f32 %v148_v18, %v215_v16 }
  0xaa   :  { %v268_v6 = vpop.f32.mrf.mxu1  ;;  %v286_v19 = vadd.f32 %v285_v5, %v266_v2 }
  0xac   :  { %v295_v24 = vmax.f32 %v224_v21, %v286_v19 }
  0xae   :  { %v197_v7 = vpop.f32.mrf.mxu2 }
  0xaf   :  { %v133_v8 = vpop.f32.mrf.mxu0  ;;  %v217_v29 = vadd.f32 %v216_v60, %v197_v7 }
  0xb0   :  { %v153_v25 = vadd.f32 %v152_v61, %v133_v8 }
  0xb1   :  { %v287_v9 = vpop.f32.mrf.mxu3  ;;  %v225_v39 = vmax.f32 %v150_v33, %v217_v29 }
  0xb2   :  { %v271_v10 = vpop.f32.mrf.mxu1  ;;  %v288_v34 = vadd.f32 %v287_v9, %v268_v6 }
  0xb4   :  { %v296_v43 = vmax.f32 %v225_v39, %v288_v34 }
  0xb6   :  { %v200_v11 = vpop.f32.mrf.mxu2 }
  0xb7   :  { %v135_v13 = vpop.f32.mrf.mxu0  ;;  %v220_v22 = vadd.f32 %v219_v62, %v200_v11 }
  0xb8   :  { %v155_v44 = vadd.f32 %v154_v63, %v135_v13 }
  0xb9   :  { %v290_v12 = vpop.f32.mrf.mxu3  ;;  %v226_v31 = vmax.f32 %v153_v25, %v220_v22 }
  0xba   :  { %v273_v14 = vpop.f32.mrf.mxu1  ;;  %v291_v26 = vadd.f32 %v290_v12, %v271_v10 }
  0xbc   :  { %v297_v36 = vmax.f32 %v226_v31, %v291_v26 }
  0xbe   :  { %v202_v15 = vpop.f32.mrf.mxu2 }
  0xbf   :  { %v337_v20 = vpop.f32.mrf.mxu0  ;;  %v222_v40 = vadd.f32 %v221_v1, %v202_v15 }
  0xc1   :  { %v292_v17 = vpop.f32.mrf.mxu3  ;;  %v227_v51 = vmax.f32 %v155_v44, %v222_v40 }
  0xc2   :  { %v342_v30 = vpop.f32.mrf.mxu1  ;;  %v293_v47 = vadd.f32 %v292_v17, %v273_v14 }
  0xc4   :  { %v298_v56 = vmax.f32 %v227_v51, %v293_v47 }
  0xc6   :  { %v356_v23 = vpop.f32.mrf.mxu2 }
  0xc7   :  { %v357_v27 = vadd.f32 %v356_v23, %v337_v20  ;;  %v339_v45 = vpop.f32.mrf.mxu0 }
  0xc9   :  { %v366_v32 = vmax.f32 %v295_v24, %v357_v27  ;;  %v361_v35 = vpop.f32.mrf.mxu3 }
  0xca   :  { %v362_v38 = vadd.f32 %v361_v35, %v342_v30  ;;  %v344_v54 = vpop.f32.mrf.mxu1 }
  0xcb   :  { %v376_v37 = vadd.f32 %v584_v28, %v366_v32 }
  0xcc   :  { %v368_v42 = vmax.f32 %v297_v36, %v362_v38 }
  0xcd   :  { %v384_v41 = vmin.f32 %v376_v37, 0.0  ;;  %vm380_vm2 = vcmp.gt.f32.partialorder %v376_v37, 0.0 }
  0xce   :  { %v358_v46 = vpop.f32.mrf.mxu2  ;;  %v378_v49 = vadd.f32 %v584_v28, %v368_v42 }
  0xcf   :  { %v388_v48 = vmul.f32 1.442695, %v384_v41  ;;  %v359_v50 = vadd.f32 %v358_v46, %v339_v45 }
  0xd0   :  { %v386_v52 = vmin.f32 %v378_v49, 0.0  ;;  %vm382_vm3 = vcmp.gt.f32.partialorder %v378_v49, 0.0 }
  0xd1   :  { %585 = vpow2.f32 %v388_v48  ;;  %v367_v53 = vmax.f32 %v296_v43, %v359_v50  ;;  %v363_v55 = vpop.f32.mrf.mxu3 }
  0xd2   :  { %v392_v57 = vmul.f32 1.442695, %v386_v52  ;;  %v364_v59 = vadd.f32 %v363_v55, %v344_v54 }
  0xd3   :  { %v377_v58 = vadd.f32 %v584_v28, %v367_v53  ;;  %v370_v63 = vmax.f32 %v366_v32, %v367_v53 }
  0xd4   :  { %587 = vpow2.f32 %v392_v57  ;;  %v369_v61 = vmax.f32 %v298_v56, %v364_v59 }
  0xd5   :  { %v385_v60 = vmin.f32 %v377_v58, 0.0  ;;  %vm381_vm4 = vcmp.gt.f32.partialorder %v377_v58, 0.0 }
  0xd6   :  { %v371_v1 = vmax.f32 %v368_v42, %v369_v61  ;;  %v379_v2 = vadd.f32 %v584_v28, %v369_v61 }
  0xd7   :  { %v586_v62 = vpop.eup %585  ;;  %v390_v0 = vmul.f32 1.442695, %v385_v60 }
  0xd8   :  { %v545_v3 = vadd.f32 -1.0, %v586_v62  ;;  %v372_v4 = vmax.f32 %v370_v63, %v371_v1  ;;  %v387_v5 = vmin.f32 %v379_v2, 0.0  ;;  %vm383_vm5 = vcmp.gt.f32.partialorder %v379_v2, 0.0 }
  0xd9   :  { %589 = vpow2.f32 %v390_v0 }
  0xda   :  { %v400_v6 = vsel %vm380_vm2, %v376_v37, %v545_v3  ;;  %v588_v7 = vpop.eup %587  ;;  %v394_v8 = vmul.f32 1.442695, %v387_v5  ;;  %v409_v9 = vadd.f32 %v584_v28, %v372_v4 }
  0xdb   :  { %405 = vst.msk [vmem:[%s805_s3] sm:$0xff] %vm404_vm1, %v400_v6  ;;  %v547_v10 = vadd.f32 -1.0, %v588_v7 }
  0xdc   :  { %591 = vpow2.f32 %v394_v8  ;;  %v411_v11 = vmin.f32 %v409_v9, 0.0  ;;  %vm410_vm6 = vcmp.gt.f32.partialorder %v409_v9, 0.0 }
  0xdd   :  { %v402_v12 = vsel %vm382_vm3, %v378_v49, %v547_v10 }
  0xde   :  { %407 = vst.msk [vmem:[%s805_s3 + $0x10] sm:$0xff] %vm404_vm1, %v402_v12  ;;  %v412_v14 = vmul.f32 1.442695, %v411_v11 }
  0xdf   :  { %v590_v13 = vpop.eup %589 }
  0xe0   :  { %v546_v15 = vadd.f32 -1.0, %v590_v13  ;;  %593 = vpow2.f32 %v412_v14 }
  0xe2   :  { %v401_v16 = vsel %vm381_vm4, %v377_v58, %v546_v15  ;;  %v592_v17 = vpop.eup %591 }
  0xe3   :  { %406 = vst.msk [vmem:[%s805_s3 + $0x8] sm:$0xff] %vm404_vm1, %v401_v16  ;;  %v548_v18 = vadd.f32 -1.0, %v592_v17 }
  0xe5   :  { %v403_v19 = vsel %vm383_vm5, %v379_v2, %v548_v18 }
  0xe6   :  { %v594_v20 = vpop.eup %593  ;;  %408 = vst.msk [vmem:[%s805_s3 + $0x18] sm:$0xff] %vm404_vm1, %v403_v19 }
  0xe7   :  { %v549_v21 = vadd.f32 -1.0, %v594_v20 }
  0xe9   :  { %v415_v22 = vsel %vm410_vm6, %v409_v9, %v549_v21 }
  0xea   :  { %416 = vst.msk [vmem:[%s806_s4] sm:$0xff] %vm404_vm1, %v415_v22 }

// kernel: ownnet_forward.5
= control target key start
LH: loop header
LB: loop body
LE: loop exit
PB: predicated region body
PF: predicated region fallthrough
CT: control target
= control target key end

     0   :  { %vm546_vm0 = vcmask 261120   ;;  %s2052_s0 = inlined_call_operand.vmem [shape: bf16[2,672], index: 0, kind: input, shape index: {}]   ;;  %s2053_s1 = inlined_call_operand.vmem [shape: bf16[672,256], index: 1, kind: input, shape index: {}]   ;;  %s2054_s2 = inlined_call_operand.vmem [shape: f32[1,256], index: 2, kind: input, shape index: {}]   ;;  %s2055_s3 = inlined_call_operand.vmem [shape: bf16[256,10], index: 3, kind: input, shape index: {}]   ;;  %s2056_s4 = inlined_call_operand.vmem [shape: f32[1,10], index: 4, kind: input, shape index: {}]   ;;  %s2057_s5 = inlined_call_operand.hbm [shape: f32[2,10], index: 5, kind: output, shape index: {}]  }
   0x1   :  { %v953_v0 = vld [vmem:[%s2053_s1 + $0x70] sm:$0xf]  ;;  %v1314_v1 = vld [vmem:[%s2053_s1 + $0x74] sm:$0xf0]  ;;  %v945_v5 = vld [vmem:[%s2053_s1 + $0x60] sm:$0xf] }
   0x2   :  { %v1081_v2 = vld [vmem:[%s2053_s1 + $0x170] sm:$0xf]  ;;  %v954_v3 = vor.u32 %v1314_v1, %v953_v0  ;;  %v1346_v4 = vld [vmem:[%s2053_s1 + $0x174] sm:$0xf0]  ;;  %v1312_v6 = vld [vmem:[%s2053_s1 + $0x64] sm:$0xf0] }
   0x3   :  { %v1082_v7 = vor.u32 %v1346_v4, %v1081_v2  ;;  %v1073_v8 = vld [vmem:[%s2053_s1 + $0x160] sm:$0xf]  ;;  %v1344_v9 = vld [vmem:[%s2053_s1 + $0x164] sm:$0xf0]  ;;  %v1145_v10 = vld [vmem:[%s2053_s1 + $0x1f0] sm:$0xf]  ;;  %v946_v11 = vor.u32 %v1312_v6, %v945_v5 }
   0x4   :  { %549 = vmatpush.bf16.msra.mxu0 %v954_v3  ;;  %v1362_v12 = vld [vmem:[%s2053_s1 + $0x1f4] sm:$0xf0]  ;;  %v1074_v13 = vor.u32 %v1344_v9, %v1073_v8  ;;  %v937_v15 = vld [vmem:[%s2053_s1 + $0x50] sm:$0xf]  ;;  %v1137_v17 = vld [vmem:[%s2053_s1 + $0x1e0] sm:$0xf] }
   0x5   :  { %575 = vmatpush.bf16.msra.mxu2 %v1082_v7  ;;  %v1146_v14 = vor.u32 %v1362_v12, %v1145_v10  ;;  %v1310_v16 = vld [vmem:[%s2053_s1 + $0x54] sm:$0xf0]  ;;  %v1065_v18 = vld [vmem:[%s2053_s1 + $0x150] sm:$0xf]  ;;  %v1360_v20 = vld [vmem:[%s2053_s1 + $0x1e4] sm:$0xf0] }
   0x6   :  { %v1342_v19 = vld [vmem:[%s2053_s1 + $0x154] sm:$0xf0]  ;;  %v1138_v21 = vor.u32 %v1360_v20, %v1137_v17  ;;  %v1017_v22 = vld [vmem:[%s2053_s1 + $0xf0] sm:$0xf]  ;;  %v938_v23 = vor.u32 %v1310_v16, %v937_v15  ;;  %v929_v28 = vld [vmem:[%s2053_s1 + $0x40] sm:$0xf] }
   0x7   :  { %588 = vmatpush.bf16.msra.mxu3 %v1146_v14  ;;  %v1330_v24 = vld [vmem:[%s2053_s1 + $0xf4] sm:$0xf0]  ;;  %v1129_v25 = vld [vmem:[%s2053_s1 + $0x1d0] sm:$0xf]  ;;  %v1066_v27 = vor.u32 %v1342_v19, %v1065_v18  ;;  %v1308_v29 = vld [vmem:[%s2053_s1 + $0x44] sm:$0xf0] }
   0x8   :  { %550 = vmatpush.bf16.msra.mxu0 %v946_v11  ;;  %v1358_v26 = vld [vmem:[%s2053_s1 + $0x1d4] sm:$0xf0]  ;;  %v1057_v30 = vld [vmem:[%s2053_s1 + $0x140] sm:$0xf]  ;;  %v1018_v31 = vor.u32 %v1330_v24, %v1017_v22  ;;  %v1340_v32 = vld [vmem:[%s2053_s1 + $0x144] sm:$0xf0]  ;;  %v930_v37 = vor.u32 %v1308_v29, %v929_v28 }
   0x9   :  { %576 = vmatpush.bf16.msra.mxu2 %v1074_v13  ;;  %v1009_v33 = vld [vmem:[%s2053_s1 + $0xe0] sm:$0xf]  ;;  %v1328_v34 = vld [vmem:[%s2053_s1 + $0xe4] sm:$0xf0]  ;;  %v1130_v35 = vor.u32 %v1358_v26, %v1129_v25  ;;  %v921_v38 = vld [vmem:[%s2053_s1 + $0x30] sm:$0xf]  ;;  %v1058_v41 = vor.u32 %v1340_v32, %v1057_v30 }
   0xa   :  { %562 = vmatpush.bf16.msra.mxu1 %v1018_v31  ;;  %v1010_v36 = vor.u32 %v1328_v34, %v1009_v33  ;;  %v1121_v39 = vld [vmem:[%s2053_s1 + $0x1c0] sm:$0xf]  ;;  %v1356_v40 = vld [vmem:[%s2053_s1 + $0x1c4] sm:$0xf0]  ;;  %v1306_v42 = vld [vmem:[%s2053_s1 + $0x34] sm:$0xf0] }
   0xb   :  { %589 = vmatpush.bf16.msra.mxu3 %v1138_v21  ;;  %v1001_v43 = vld [vmem:[%s2053_s1 + $0xd0] sm:$0xf]  ;;  %v1326_v44 = vld [vmem:[%s2053_s1 + $0xd4] sm:$0xf0]  ;;  %v1122_v47 = vor.u32 %v1356_v40, %v1121_v39  ;;  %v922_v50 = vor.u32 %v1306_v42, %v921_v38  ;;  %v993_v52 = vld [vmem:[%s2053_s1 + $0xc0] sm:$0xf] }
   0xc   :  { %551 = vmatpush.bf16.msra.mxu0 %v938_v23  ;;  %v1049_v45 = vld [vmem:[%s2053_s1 + $0x130] sm:$0xf]  ;;  %v1338_v46 = vld [vmem:[%s2053_s1 + $0x134] sm:$0xf0]  ;;  %v1002_v48 = vor.u32 %v1326_v44, %v1001_v43  ;;  %v1324_v53 = vld [vmem:[%s2053_s1 + $0xc4] sm:$0xf0] }
   0xd   :  { %577 = vmatpush.bf16.msra.mxu2 %v1066_v27  ;;  %v1113_v49 = vld [vmem:[%s2053_s1 + $0x1b0] sm:$0xf]  ;;  %v1354_v51 = vld [vmem:[%s2053_s1 + $0x1b4] sm:$0xf0]  ;;  %v1050_v54 = vor.u32 %v1338_v46, %v1049_v45  ;;  %v913_v55 = vld [vmem:[%s2053_s1 + $0x20] sm:$0xf]  ;;  %v994_v60 = vor.u32 %v1324_v53, %v993_v52 }
   0xe   :  { %563 = vmatpush.bf16.msra.mxu1 %v1010_v36  ;;  %v1304_v56 = vld [vmem:[%s2053_s1 + $0x24] sm:$0xf0]  ;;  %v1041_v57 = vld [vmem:[%s2053_s1 + $0x120] sm:$0xf]  ;;  %v1114_v59 = vor.u32 %v1354_v51, %v1113_v49  ;;  %v985_v0 = vld [vmem:[%s2053_s1 + $0xb0] sm:$0xf] }
   0xf   :  { %590 = vmatpush.bf16.msra.mxu3 %v1130_v35  ;;  %v1336_v58 = vld [vmem:[%s2053_s1 + $0x124] sm:$0xf0]  ;;  %v1105_v61 = vld [vmem:[%s2053_s1 + $0x1a0] sm:$0xf]  ;;  %v914_v62 = vor.u32 %v1304_v56, %v913_v55  ;;  %v1322_v1 = vld [vmem:[%s2053_s1 + $0xb4] sm:$0xf0] }
  0x10   :  { %552 = vmatpush.bf16.msra.mxu0 %v930_v37  ;;  %v1352_v63 = vld [vmem:[%s2053_s1 + $0x1a4] sm:$0xf0]  ;;  %v1042_v2 = vor.u32 %v1336_v58, %v1041_v57  ;;  %v905_v3 = vld [vmem:[%s2053_s1 + $0x10] sm:$0xf]  ;;  %v1302_v4 = vld [vmem:[%s2053_s1 + $0x14] sm:$0xf0]  ;;  %v986_v8 = vor.u32 %v1322_v1, %v985_v0 }
  0x11   :  { %578 = vmatpush.bf16.msra.mxu2 %v1058_v41  ;;  %v1033_v5 = vld [vmem:[%s2053_s1 + $0x110] sm:$0xf]  ;;  %v1334_v6 = vld [vmem:[%s2053_s1 + $0x114] sm:$0xf0]  ;;  %v1106_v7 = vor.u32 %v1352_v63, %v1105_v61  ;;  %v906_v10 = vor.u32 %v1302_v4, %v905_v3  ;;  %v977_v12 = vld [vmem:[%s2053_s1 + $0xa0] sm:$0xf] }
  0x12   :  { %564 = vmatpush.bf16.msra.mxu1 %v1002_v48  ;;  %v1097_v9 = vld [vmem:[%s2053_s1 + $0x190] sm:$0xf]  ;;  %v1350_v11 = vld [vmem:[%s2053_s1 + $0x194] sm:$0xf0]  ;;  %v1320_v13 = vld [vmem:[%s2053_s1 + $0xa4] sm:$0xf0]  ;;  %v1034_v14 = vor.u32 %v1334_v6, %v1033_v5 }
  0x13   :  { %591 = vmatpush.bf16.msra.mxu3 %v1122_v47  ;;  %v897_v15 = vld [vmem:[%s2053_s1] sm:$0xf]  ;;  %v1300_v16 = vld [vmem:[%s2053_s1 + $0x4] sm:$0xf0]  ;;  %v1209_v19 = vld [vmem:[%s2053_s1 + $0x270] sm:$0xf]  ;;  %v1098_v23 = vor.u32 %v1350_v11, %v1097_v9  ;;  %v978_v24 = vor.u32 %v1320_v13, %v977_v12 }
  0x14   :  { %553 = vmatpush.bf16.msra.mxu0 %v922_v50  ;;  %v1025_v17 = vld [vmem:[%s2053_s1 + $0x100] sm:$0xf]  ;;  %v1332_v18 = vld [vmem:[%s2053_s1 + $0x104] sm:$0xf0]  ;;  %v1378_v20 = vld [vmem:[%s2053_s1 + $0x274] sm:$0xf0]  ;;  %v898_v26 = vor.u32 %v1300_v16, %v897_v15 }
  0x15   :  { %579 = vmatpush.bf16.msra.mxu2 %v1050_v54  ;;  %v1313_v21 = vld [vmem:[%s2053_s1 + $0x74] sm:$0xf]  ;;  %v955_v22 = vld [vmem:[%s2053_s1 + $0x78] sm:$0xf0]  ;;  %v1089_v25 = vld [vmem:[%s2053_s1 + $0x180] sm:$0xf]  ;;  %v1026_v30 = vor.u32 %v1332_v18, %v1025_v17  ;;  %v1210_v31 = vor.u32 %v1378_v20, %v1209_v19 }
  0x16   :  { %565 = vmatpush.bf16.msra.mxu1 %v994_v60  ;;  %v1348_v27 = vld [vmem:[%s2053_s1 + $0x184] sm:$0xf0]  ;;  %v969_v28 = vld [vmem:[%s2053_s1 + $0x90] sm:$0xf]  ;;  %v1318_v29 = vld [vmem:[%s2053_s1 + $0x94] sm:$0xf0]  ;;  %v958_v35 = vor.u32 %v1313_v21, %v955_v22 }
  0x17   :  { %592 = vmatpush.bf16.msra.mxu3 %v1114_v59  ;;  %v1329_v32 = vld [vmem:[%s2053_s1 + $0xf4] sm:$0xf]  ;;  %v1019_v33 = vld [vmem:[%s2053_s1 + $0xf8] sm:$0xf0]  ;;  %v22_v34 = vld [vmem:[%s2052_s0] sm:$0x3f]  ;;  %v1090_v40 = vor.u32 %v1348_v27, %v1089_v25  ;;  %v970_v41 = vor.u32 %v1318_v29, %v969_v28 }
  0x18   :  { %554 = vmatpush.bf16.msra.mxu0 %v914_v62  ;;  %v1201_v36 = vld [vmem:[%s2053_s1 + $0x260] sm:$0xf]  ;;  %v1376_v37 = vld [vmem:[%s2053_s1 + $0x264] sm:$0xf0]  ;;  %114 = vst [vmem:[#allocation1] ss:$9 sm:$0xff] %v22_v34  ;;  %v1022_v42 = vor.u32 %v1329_v32, %v1019_v33 }
  0x19   :  { %580 = vmatpush.bf16.msra.mxu2 %v1042_v2  ;;  %v1311_v38 = vld [vmem:[%s2053_s1 + $0x64] sm:$0xf]  ;;  %v947_v39 = vld [vmem:[%s2053_s1 + $0x68] sm:$0xf0]  ;;  %v961_v44 = vld [vmem:[%s2053_s1 + $0x80] sm:$0xf]  ;;  %v1202_v46 = vor.u32 %v1376_v37, %v1201_v36 }
  0x1a   :  { %566 = vmatpush.bf16.msra.mxu1 %v986_v8  ;;  %v1327_v43 = vld [vmem:[%s2053_s1 + $0xe4] sm:$0xf]  ;;  %v1316_v45 = vld [vmem:[%s2053_s1 + $0x84] sm:$0xf0]  ;;  %v1011_v47 = vld [vmem:[%s2053_s1 + $0xe8] sm:$0xf0]  ;;  %v950_v50 = vor.u32 %v1311_v38, %v947_v39 }
  0x1b   :  { %593 = vmatpush.bf16.msra.mxu3 %v1106_v7  ;;  %v1225_v48 = vld [vmem:[%s2053_s1 + $0x290] sm:$0xf]  ;;  %v1382_v49 = vld [vmem:[%s2053_s1 + $0x294] sm:$0xf0]  ;;  %v1309_v53 = vld [vmem:[%s2053_s1 + $0x54] sm:$0xf]  ;;  %v962_v55 = vor.u32 %v1316_v45, %v961_v44  ;;  %v1014_v56 = vor.u32 %v1327_v43, %v1011_v47 }
  0x1c   :  { %555 = vmatpush.bf16.msra.mxu0 %v906_v10  ;;  %v1193_v51 = vld [vmem:[%s2053_s1 + $0x250] sm:$0xf]  ;;  %v1374_v52 = vld [vmem:[%s2053_s1 + $0x254] sm:$0xf0]  ;;  %v939_v54 = vld [vmem:[%s2053_s1 + $0x58] sm:$0xf0]  ;;  %v1226_v61 = vor.u32 %v1382_v49, %v1225_v48 }
  0x1d   :  { %581 = vmatpush.bf16.msra.mxu2 %v1034_v14  ;;  %v1185_v57 = vld [vmem:[%s2053_s1 + $0x240] sm:$0xf]  ;;  %v1372_v58 = vld [vmem:[%s2053_s1 + $0x244] sm:$0xf0]  ;;  %v1325_v59 = vld [vmem:[%s2053_s1 + $0xd4] sm:$0xf]  ;;  %v1194_v63 = vor.u32 %v1374_v52, %v1193_v51  ;;  %v942_v3 = vor.u32 %v1309_v53, %v939_v54 }
  0x1e   :  { %567 = vmatpush.bf16.msra.mxu1 %v978_v24  ;;  %v1003_v60 = vld [vmem:[%s2053_s1 + $0xd8] sm:$0xf0]  ;;  %v1217_v62 = vld [vmem:[%s2053_s1 + $0x280] sm:$0xf]  ;;  %v1380_v2 = vld [vmem:[%s2053_s1 + $0x284] sm:$0xf0]  ;;  %v1186_v12 = vor.u32 %v1372_v58, %v1185_v57 }
  0x1f   :  { %594 = vmatpush.bf16.msra.mxu3 %v1098_v23  ;;  %v1726_v0 = vld [vmem:[#allocation1] sm:$0xff]  ;;  %v1728_v1 = vld [vmem:[#allocation1 + $0x12] sm:$0xff]  ;;  %v1083_v6 = vld [vmem:[%s2053_s1 + $0x178] sm:$0xf0]  ;;  %v1006_v10 = vor.u32 %v1325_v59, %v1003_v60  ;;  %v1218_v11 = vor.u32 %v1380_v2, %v1217_v62 }
  0x20   :  { %556 = vmatpush.bf16.msra.mxu0 %v898_v26  ;;  %v1734_v4 = vld [vmem:[#allocation1 + $0x1b] sm:$0xff]  ;;  %v1345_v5 = vld [vmem:[%s2053_s1 + $0x174] sm:$0xf]  ;;  %v1307_v7 = vld [vmem:[%s2053_s1 + $0x44] sm:$0xf] }
  0x21   :  { %582 = vmatpush.bf16.msra.mxu2 %v1026_v30  ;;  %v931_v8 = vld [vmem:[%s2053_s1 + $0x48] sm:$0xf0]  ;;  %v1177_v13 = vld [vmem:[%s2053_s1 + $0x230] sm:$0xf]  ;;  %v1323_v14 = vld [vmem:[%s2053_s1 + $0xc4] sm:$0xf]  ;;  %v1086_v16 = vor.u32 %v1345_v5, %v1083_v6 }
  0x22   :  { %568 = vmatpush.bf16.msra.mxu1 %v970_v41  ;;  %v1748_v9 = vld [vmem:[#allocation1 + $0x9] sm:$0xff]  ;;  %v934_v17 = vor.u32 %v1307_v7, %v931_v8  ;;  %v1370_v18 = vld [vmem:[%s2053_s1 + $0x234] sm:$0xf0]  ;;  %v1343_v19 = vld [vmem:[%s2053_s1 + $0x164] sm:$0xf] }
  0x23   :  { %595 = vmatpush.bf16.msra.mxu3 %v1090_v40  ;;  %557 = vmatmul.bf16.vlgmr.msra.gmra.mxu0 %v1726_v0  ;;  %v995_v15 = vld [vmem:[%s2053_s1 + $0xc8] sm:$0xf0]  ;;  %v1305_v21 = vld [vmem:[%s2053_s1 + $0x34] sm:$0xf]  ;;  %v923_v22 = vld [vmem:[%s2053_s1 + $0x38] sm:$0xf0]  ;;  %v1178_v24 = vor.u32 %v1370_v18, %v1177_v13 }
  0x24   :  { %601 = vmatpush.bf16.msrb.mxu0 %v1210_v31  ;;  %583 = vmatmul.bf16.vlgmr.msra.gmra.mxu2 %v1728_v1  ;;  %v1075_v20 = vld [vmem:[%s2053_s1 + $0x168] sm:$0xf0]  ;;  %v998_v23 = vor.u32 %v1323_v14, %v995_v15  ;;  %v1169_v25 = vld [vmem:[%s2053_s1 + $0x220] sm:$0xf]  ;;  %v1321_v26 = vld [vmem:[%s2053_s1 + $0xb4] sm:$0xf]  ;;  %v926_v29 = vor.u32 %v1305_v21, %v923_v22 }
  0x25   :  { %627 = vmatpush.bf16.msrb.mxu2 %v958_v35  ;;  %v987_v27 = vld [vmem:[%s2053_s1 + $0xb8] sm:$0xf0]  ;;  %v1078_v28 = vor.u32 %v1343_v19, %v1075_v20  ;;  %v1368_v30 = vld [vmem:[%s2053_s1 + $0x224] sm:$0xf0]  ;;  %v1341_v31 = vld [vmem:[%s2053_s1 + $0x154] sm:$0xf] }
  0x26   :  { %569 = vmatpush.bf16.msra.mxu1 %v962_v55  ;;  %596 = vmatmul.bf16.vlgmr.msra.gmra.mxu3 %v1734_v4  ;;  %v1067_v32 = vld [vmem:[%s2053_s1 + $0x158] sm:$0xf0]  ;;  %v1303_v33 = vld [vmem:[%s2053_s1 + $0x24] sm:$0xf]  ;;  %v915_v34 = vld [vmem:[%s2053_s1 + $0x28] sm:$0xf0]  ;;  %v990_v35 = vor.u32 %v1321_v26, %v987_v27  ;;  %v1170_v36 = vor.u32 %v1368_v30, %v1169_v25 }
  0x27   :  { %640 = vmatpush.bf16.msrb.mxu3 %v1022_v42  ;;  %v1161_v37 = vld [vmem:[%s2053_s1 + $0x210] sm:$0xf]  ;;  %v1319_v38 = vld [vmem:[%s2053_s1 + $0xa4] sm:$0xf]  ;;  %v979_v39 = vld [vmem:[%s2053_s1 + $0xa8] sm:$0xf0]  ;;  %v1070_v40 = vor.u32 %v1341_v31, %v1067_v32  ;;  %v918_v41 = vor.u32 %v1303_v33, %v915_v34 }
  0x28   :  { %602 = vmatpush.bf16.msrb.mxu0 %v1202_v46  ;;  %v1366_v42 = vld [vmem:[%s2053_s1 + $0x214] sm:$0xf0]  ;;  %v1339_v43 = vld [vmem:[%s2053_s1 + $0x144] sm:$0xf]  ;;  %v1059_v44 = vld [vmem:[%s2053_s1 + $0x148] sm:$0xf0]  ;;  %v982_v47 = vor.u32 %v1319_v38, %v979_v39 }
  0x29   :  { %628 = vmatpush.bf16.msrb.mxu2 %v950_v50  ;;  %570 = vmatmul.bf16.vlgmr.msra.gmra.mxu1 %v1748_v9  ;;  %v1301_v45 = vld [vmem:[%s2053_s1 + $0x14] sm:$0xf]  ;;  %v907_v46 = vld [vmem:[%s2053_s1 + $0x18] sm:$0xf0]  ;;  %v1153_v48 = vld [vmem:[%s2053_s1 + $0x200] sm:$0xf]  ;;  %v1162_v50 = vor.u32 %v1366_v42, %v1161_v37  ;;  %v1062_v54 = vor.u32 %v1339_v43, %v1059_v44 }
  0x2a   :  { %620 = vmatpush.bf16.msrb.mxu1 %v1226_v61  ;;  %v1364_v49 = vld [vmem:[%s2053_s1 + $0x204] sm:$0xf0]  ;;  %v1299_v51 = vld [vmem:[%s2053_s1 + $0x4] sm:$0xf]  ;;  %v1317_v52 = vld [vmem:[%s2053_s1 + $0x94] sm:$0xf]  ;;  %v910_v55 = vor.u32 %v1301_v45, %v907_v46 }
  0x2b   :  { %641 = vmatpush.bf16.msrb.mxu3 %v1014_v56  ;;  %v971_v53 = vld [vmem:[%s2053_s1 + $0x98] sm:$0xf0]  ;;  %v899_v56 = vld [vmem:[%s2053_s1 + $0x8] sm:$0xf0]  ;;  %v1337_v57 = vld [vmem:[%s2053_s1 + $0x134] sm:$0xf] }
  0x2c   :  { %603 = vmatpush.bf16.msrb.mxu0 %v1194_v63  ;;  %v1051_v58 = vld [vmem:[%s2053_s1 + $0x138] sm:$0xf0]  ;;  %v1361_v59 = vld [vmem:[%s2053_s1 + $0x1f4] sm:$0xf]  ;;  %v974_v2 = vor.u32 %v1317_v52, %v971_v53  ;;  %v1359_v5 = vld [vmem:[%s2053_s1 + $0x1e4] sm:$0xf] }
  0x2d   :  { %629 = vmatpush.bf16.msrb.mxu2 %v942_v3  ;;  %v1147_v60 = vld [vmem:[%s2053_s1 + $0x1f8] sm:$0xf0]  ;;  %v1855_v61 = vld [vmem:[#allocation1 + $0x2d] sm:$0xff]  ;;  %v1154_v3 = vor.u32 %v1364_v49, %v1153_v48  ;;  %v1315_v6 = vld [vmem:[%s2053_s1 + $0x84] sm:$0xf]  ;;  %v1054_v8 = vor.u32 %v1337_v57, %v1051_v58 }
  0x2e   :  { %621 = vmatpush.bf16.msrb.mxu1 %v1218_v11  ;;  %v1377_v62 = vld [vmem:[%s2053_s1 + $0x274] sm:$0xf]  ;;  %v1211_v63 = vld [vmem:[%s2053_s1 + $0x278] sm:$0xf0]  ;;  %v963_v7 = vld [vmem:[%s2053_s1 + $0x88] sm:$0xf0]  ;;  %v1150_v11 = vor.u32 %v1361_v59, %v1147_v60 }
  0x2f   :  { %642 = vmatpush.bf16.msrb.mxu3 %v1006_v10  ;;  %v902_v10 = vor.u32 %v1299_v51, %v899_v56  ;;  %v1335_v13 = vld [vmem:[%s2053_s1 + $0x124] sm:$0xf]  ;;  %v1043_v14 = vld [vmem:[%s2053_s1 + $0x128] sm:$0xf0]  ;;  %v1214_v15 = vor.u32 %v1377_v62, %v1211_v63  ;;  %v966_v20 = vor.u32 %v1315_v6, %v963_v7 }
  0x30   :  { %604 = vmatpush.bf16.msrb.mxu0 %v1186_v12  ;;  %v1139_v12 = vld [vmem:[%s2053_s1 + $0x1e8] sm:$0xf0]  ;;  %v1375_v18 = vld [vmem:[%s2053_s1 + $0x264] sm:$0xf] }
  0x31   :  { %630 = vmatpush.bf16.msrb.mxu2 %v934_v17  ;;  %v1227_v17 = vld [vmem:[%s2053_s1 + $0x298] sm:$0xf0]  ;;  %v1203_v19 = vld [vmem:[%s2053_s1 + $0x268] sm:$0xf0] }
  0x32   :  { %653 = vmatpush.bf16.msra.mxu1 %v1086_v16  ;;  %v1381_v16 = vld [vmem:[%s2053_s1 + $0x294] sm:$0xf] }
  0x33   :  { %643 = vmatpush.bf16.msrb.mxu3 %v998_v23 }
  0x34   :  { %605 = vmatpush.bf16.msrb.mxu0 %v1178_v24 }
  0x35   :  { %631 = vmatpush.bf16.msrb.mxu2 %v926_v29 }
  0x36   :  { %654 = vmatpush.bf16.msra.mxu1 %v1078_v28 }
  0x37   :  { %644 = vmatpush.bf16.msrb.mxu3 %v990_v35 }
  0x38   :  { %606 = vmatpush.bf16.msrb.mxu0 %v1170_v36 }
  0x39   :  { %632 = vmatpush.bf16.msrb.mxu2 %v918_v41  ;;  %1231 = vmatmul.msk.bf16.vlgmr.msrb.gmra.mxu1 %vm546_vm0, %v1855_v61 }
  0x3a   :  { %655 = vmatpush.bf16.msra.mxu1 %v1070_v40 }
  0x3b   :  { %645 = vmatpush.bf16.msrb.mxu3 %v982_v47 }
  0x3c   :  { %607 = vmatpush.bf16.msrb.mxu0 %v1162_v50 }
  0x3d   :  { %633 = vmatpush.bf16.msrb.mxu2 %v910_v55 }
  0x3e   :  { %656 = vmatpush.bf16.msra.mxu1 %v1062_v54 }
  0x3f   :  { %646 = vmatpush.bf16.msrb.mxu3 %v974_v2 }
  0x40   :  { %10 = vsyncpa [#allocation3], 0  ;;  %608 = vmatpush.bf16.msrb.mxu0 %v1154_v3  ;;  %v1895_v21 = vld [vmem:[#allocation1 + $0x24] sm:$0xff]  ;;  %v1046_v22 = vor.u32 %v1335_v13, %v1043_v14  ;;  %v1142_v23 = vor.u32 %v1359_v5, %v1139_v12  ;;  %v1357_v24 = vld [vmem:[%s2053_s1 + $0x1d4] sm:$0xf]  ;;  %v1230_v25 = vor.u32 %v1381_v16, %v1227_v17  ;;  %v1206_v28 = vor.u32 %v1375_v18, %v1203_v19  ;;  %s1431_s29 = smov [#allocation2]  }
  0x41   :  { %634 = vmatpush.bf16.msrb.mxu2 %v902_v10  ;;  %v1333_v26 = vld [vmem:[%s2053_s1 + $0x114] sm:$0xf]  ;;  %v1035_v27 = vld [vmem:[%s2053_s1 + $0x118] sm:$0xf0]  ;;  %v1379_v30 = vld [vmem:[%s2053_s1 + $0x284] sm:$0xf] }
  0x42   :  { %657 = vmatpush.bf16.msra.mxu1 %v1054_v8  ;;  %v1131_v29 = vld [vmem:[%s2053_s1 + $0x1d8] sm:$0xf0]  ;;  %v1219_v31 = vld [vmem:[%s2053_s1 + $0x288] sm:$0xf0]  ;;  %v1373_v32 = vld [vmem:[%s2053_s1 + $0x254] sm:$0xf]  ;;  %v1038_v34 = vor.u32 %v1333_v26, %v1035_v27 }
  0x43   :  { %609 = vmatmul.bf16.vlgmr.msrb.gmra.mxu0 %v1895_v21  ;;  %647 = vmatpush.bf16.msrb.mxu3 %v966_v20  ;;  %v1195_v33 = vld [vmem:[%s2053_s1 + $0x258] sm:$0xf0]  ;;  %v1134_v35 = vor.u32 %v1357_v24, %v1131_v29  ;;  %v1331_v36 = vld [vmem:[%s2053_s1 + $0x104] sm:$0xf]  ;;  %v1027_v37 = vld [vmem:[%s2053_s1 + $0x108] sm:$0xf0]  ;;  %v1222_v38 = vor.u32 %v1379_v30, %v1219_v31 }
  0x44   :  { %666 = vmatpush.bf16.msra.mxu0 %v1150_v11  ;;  %635 = vmatmul.bf16.vlgmr.msrb.gmra.mxu2 %v1726_v0  ;;  %v1198_v39 = vor.u32 %v1373_v32, %v1195_v33  ;;  %v1355_v0 = vld [vmem:[%s2053_s1 + $0x1c4] sm:$0xf]  ;;  %v1123_v40 = vld [vmem:[%s2053_s1 + $0x1c8] sm:$0xf0]  ;;  %v1030_v43 = vor.u32 %v1331_v36, %v1027_v37  ;;  %v1353_v45 = vld [vmem:[%s2053_s1 + $0x1b4] sm:$0xf] }
  0x45   :  { %679 = vmatpush.bf16.msra.mxu2 %v1214_v15  ;;  %v1371_v41 = vld [vmem:[%s2053_s1 + $0x244] sm:$0xf]  ;;  %v1187_v42 = vld [vmem:[%s2053_s1 + $0x248] sm:$0xf0]  ;;  %v1115_v46 = vld [vmem:[%s2053_s1 + $0x1b8] sm:$0xf0] }
  0x46   :  { %658 = vmatpush.bf16.msra.mxu1 %v1046_v22  ;;  %648 = vmatmul.bf16.vlgmr.msrb.gmra.mxu3 %v1748_v9  ;;  %v1126_v9 = vor.u32 %v1355_v0, %v1123_v40  ;;  %v1190_v44 = vor.u32 %v1371_v41, %v1187_v42  ;;  %v1369_v47 = vld [vmem:[%s2053_s1 + $0x234] sm:$0xf]  ;;  %v1179_v48 = vld [vmem:[%s2053_s1 + $0x238] sm:$0xf0]  ;;  %v1118_v49 = vor.u32 %v1353_v45, %v1115_v46  ;;  %v1351_v51 = vld [vmem:[%s2053_s1 + $0x1a4] sm:$0xf] }
  0x47   :  { %698 = vmatpush.bf16.msra.mxu3 %v1230_v25  ;;  %v1182_v50 = vor.u32 %v1369_v47, %v1179_v48  ;;  %v1107_v52 = vld [vmem:[%s2053_s1 + $0x1a8] sm:$0xf0]  ;;  %v1367_v53 = vld [vmem:[%s2053_s1 + $0x224] sm:$0xf]  ;;  %v1349_v57 = vld [vmem:[%s2053_s1 + $0x194] sm:$0xf] }
  0x48   :  { %667 = vmatpush.bf16.msra.mxu0 %v1142_v23  ;;  %v1171_v54 = vld [vmem:[%s2053_s1 + $0x228] sm:$0xf0]  ;;  %v1110_v55 = vor.u32 %v1351_v51, %v1107_v52  ;;  %v1099_v58 = vld [vmem:[%s2053_s1 + $0x198] sm:$0xf0]  ;;  %v1365_v59 = vld [vmem:[%s2053_s1 + $0x214] sm:$0xf] }
  0x49   :  { %680 = vmatpush.bf16.msra.mxu2 %v1206_v28  ;;  %v1174_v56 = vor.u32 %v1367_v53, %v1171_v54  ;;  %v1102_v60 = vor.u32 %v1349_v57, %v1099_v58  ;;  %v1347_v63 = vld [vmem:[%s2053_s1 + $0x184] sm:$0xf]  ;;  %v1091_v2 = vld [vmem:[%s2053_s1 + $0x188] sm:$0xf0]  ;;  %v1390_v7 = vld [vmem:[%s2055_s3 + $0x38] sm:$0xff]  ;;  %s884_s30 = sshll.u32 %s1431_s29, 4  ;;  %s885_s30 = int_to_ptr.vmem [resolvable:$true] %s884_s30 }
  0x4a   :  { %659 = vmatpush.bf16.msra.mxu1 %v1038_v34  ;;  %v1363_v3 = vld [vmem:[%s2053_s1 + $0x204] sm:$0xf]  ;;  %v1155_v5 = vld [vmem:[%s2053_s1 + $0x208] sm:$0xf0]  ;;  %v1094_v6 = vor.u32 %v1347_v63, %v1091_v2  ;;  %v1389_v8 = vld [vmem:[%s2055_s3 + $0x30] sm:$0xff]  ;;  %s886_s8 = sshll.u32 %s2057_s5, 4  ;;  %s887_s8 = int_to_ptr.hbm [resolvable:$true] %s886_s8 }
  0x4b   :  { %699 = vmatpush.bf16.msra.mxu3 %v1222_v38  ;;  %v1388_v10 = vld [vmem:[%s2055_s3 + $0x28] sm:$0xff]  ;;  %v1386_v11 = vld [vmem:[%s2055_s3 + $0x18] sm:$0xff]  ;;  %v1385_v13 = vld [vmem:[%s2055_s3 + $0x10] sm:$0xff]  ;;  %vm877_vm3 = vcmask 74752  }
  0x4c   :  { %668 = vmatpush.bf16.msra.mxu0 %v1134_v35  ;;  %v107_v14 = vld [vmem:[%s2054_s2] sm:$0x3]  ;;  %v1384_v18 = vld [vmem:[%s2055_s3 + $0x8] sm:$0xff]  ;;  %v1398_v26 = vld [vmem:[%s2055_s3 + $0x78] sm:$0xff] }
  0x4d   :  { %681 = vmatpush.bf16.msra.mxu2 %v1198_v39  ;;  %v109_v16 = vperm.slane %v107_v14, 0  ;;  %v1383_v22 = vld [vmem:[%s2055_s3] sm:$0xff]  ;;  %v1397_v30 = vld [vmem:[%s2055_s3 + $0x70] sm:$0xff]  ;;  %v1396_v32 = vld [vmem:[%s2055_s3 + $0x68] sm:$0xff]  ;;  %v110_v53 = vperm.slane %v107_v14, 1 }
  0x4e   :  { %660 = vmatpush.bf16.msra.mxu1 %v1030_v43  ;;  %v1395_v37 = vld [vmem:[%s2055_s3 + $0x60] sm:$0xff]  ;;  %v1394_v41 = vld [vmem:[%s2055_s3 + $0x58] sm:$0xff]  ;;  %v1392_v47 = vld [vmem:[%s2055_s3 + $0x48] sm:$0xff] }
  0x4f   :  { %864 = vmatpush.bf16.msrb.mxu3 %v1398_v26  ;;  %v1391_v52 = vld [vmem:[%s2055_s3 + $0x40] sm:$0xff] }
  0x50   :  { %669 = vmatpush.bf16.msra.mxu0 %v1126_v9  ;;  %v1393_v9 = vld [vmem:[%s2055_s3 + $0x50] sm:$0xff] }
  0x51   :  { %682 = vmatpush.bf16.msra.mxu2 %v1190_v44  ;;  %661 = vmatmul.bf16.vlgmr.msra.gmra.mxu1 %v1728_v1  ;;  %v1163_v1 = vld [vmem:[%s2053_s1 + $0x218] sm:$0xf0] }
  0x52   :  { %v1166_v62 = vor.u32 %v1365_v59, %v1163_v1  ;;  %851 = vmatpush.bf16.msrb.mxu1 %v1390_v7 }
  0x53   :  { %865 = vmatpush.bf16.msrb.mxu3 %v1397_v30 }
  0x54   :  { %670 = vmatpush.bf16.msra.mxu0 %v1118_v49 }
  0x55   :  { %683 = vmatpush.bf16.msra.mxu2 %v1182_v50 }
  0x56   :  { %1232 = vmatmul.msk.bf16.vlgmr.msra.gmra.mxu3 %vm546_vm0, %v1855_v61  ;;  %v1158_v61 = vor.u32 %v1363_v3, %v1155_v5  ;;  %852 = vmatpush.bf16.msrb.mxu1 %v1389_v8 }
  0x57   :  { %866 = vmatpush.bf16.msrb.mxu3 %v1396_v32 }
  0x58   :  { %671 = vmatpush.bf16.msra.mxu0 %v1110_v55 }
  0x59   :  { %684 = vmatpush.bf16.msra.mxu2 %v1174_v56 }
  0x5a   :  { %853 = vmatpush.bf16.msrb.mxu1 %v1388_v10 }
  0x5b   :  { %867 = vmatpush.bf16.msrb.mxu3 %v1395_v37 }
  0x5c   :  { %672 = vmatpush.bf16.msra.mxu0 %v1102_v60 }
  0x5d   :  { %685 = vmatpush.bf16.msra.mxu2 %v1166_v62 }
  0x5f   :  { %868 = vmatpush.bf16.msrb.mxu3 %v1394_v41 }
  0x60   :  { %673 = vmatpush.bf16.msra.mxu0 %v1094_v6 }
  0x61   :  { %686 = vmatpush.bf16.msra.mxu2 %v1158_v61 }
  0x63   :  { %674 = vmatmul.bf16.vlgmr.msra.gmra.mxu0 %v1734_v4  ;;  %v1387_v4 = vld [vmem:[%s2055_s3 + $0x20] sm:$0xff]  ;;  %869 = vmatpush.bf16.msrb.mxu3 %v1393_v9 }
  0x64   :  { %687 = vmatmul.bf16.vlgmr.msra.gmra.mxu2 %v1895_v21  ;;  %854 = vmatpush.bf16.msrb.mxu1 %v1387_v4 }
  0x67   :  { %870 = vmatpush.bf16.msrb.mxu3 %v1392_v47 }
  0x68   :  { %855 = vmatpush.bf16.msrb.mxu1 %v1386_v11 }
  0x6b   :  { %871 = vmatpush.bf16.msrb.mxu3 %v1391_v52 }
  0x6c   :  { %856 = vmatpush.bf16.msrb.mxu1 %v1385_v13 }
  0x70   :  { %857 = vmatpush.bf16.msrb.mxu1 %v1384_v18 }
  0x74   :  { %858 = vmatpush.bf16.msrb.mxu1 %v1383_v22 }
  0xa0   :  { %v558_v12 = vpop.f32.mrf.mxu0 }
  0xa1   :  { %v559_v21 = vadd.f32 %v558_v12, %v109_v16  ;;  %v1400_v12 = vld [vmem:[%s2056_s4] ss:$0 sm:$0xff] }
  0xa6   :  { %v571_v15 = vpop.f32.mrf.mxu1 }
  0xa7   :  { %v584_v17 = vpop.f32.mrf.mxu2  ;;  %v572_v24 = vadd.f32 %v571_v15, %v559_v21 }
  0xa8   :  { %v560_v19 = vpop.f32.mrf.mxu0 }
  0xa9   :  { %v597_v20 = vpop.f32.mrf.mxu3  ;;  %v585_v28 = vadd.f32 %v584_v17, %v572_v24 }
  0xab   :  { %v598_v31 = vadd.f32 %v597_v20, %v585_v28 }
  0xae   :  { %v573_v23 = vpop.f32.mrf.mxu1 }
  0xaf   :  { %v586_v25 = vpop.f32.mrf.mxu2 }
  0xb1   :  { %v599_v27 = vpop.f32.mrf.mxu3 }
  0xb6   :  { %v623_v29 = vpop.f32.mrf.mxu1 }
  0xbe   :  { %v625_v35 = vpop.f32.mrf.mxu1 }
  0xc0   :  { %v610_v33 = vpop.f32.mrf.mxu0 }
  0xc1   :  { %v611_v34 = vadd.f32 %v610_v33, %v598_v31 }
  0xc3   :  { %v624_v36 = vadd.f32 %v623_v29, %v611_v34 }
  0xc5   :  { %v707_v38 = vmin.f32 %v624_v36, 0.0  ;;  %vm705_vm1 = vcmp.gt.f32.partialorder %v624_v36, 0.0 }
  0xc7   :  { %v709_v39 = vmul.f32 1.442695, %v707_v38  ;;  %v636_v0 = vpop.f32.mrf.mxu2 }
  0xc8   :  { %v612_v40 = vpop.f32.mrf.mxu0  ;;  %v637_v54 = vadd.f32 %v636_v0, %v110_v53 }
  0xc9   :  { %1401 = vpow2.f32 %v709_v39  ;;  %v649_v42 = vpop.f32.mrf.mxu3 }
  0xca   :  { %v650_v56 = vadd.f32 %v649_v42, %v637_v54 }
  0xce   :  { %v662_v43 = vpop.f32.mrf.mxu1 }
  0xcf   :  { %v1402_v44 = vpop.eup %1401  ;;  %v638_v45 = vpop.f32.mrf.mxu2  ;;  %v663_v58 = vadd.f32 %v662_v43, %v650_v56 }
  0xd0   :  { %v1233_v46 = vadd.f32 -1.0, %v1402_v44 }
  0xd1   :  { %v651_v48 = vpop.f32.mrf.mxu3 }
  0xd2   :  { %v715_v49 = vsel %vm705_vm1, %v624_v36, %v1233_v46 }
  0xd3   :  { %v717_v50 = vpack.c.bf16 %v715_v49, %v715_v49 }
  0xd5   :  { %859 = vmatmul.bf16.vlgmr.msrb.gmra.mxu1 %v717_v50 }
  0xd6   :  { %v664_v51 = vpop.f32.mrf.mxu1 }
  0xd9   :  { %v701_v55 = vpop.f32.mrf.mxu3 }
  0xe0   :  { %v675_v57 = vpop.f32.mrf.mxu0 }
  0xe1   :  { %v703_v59 = vpop.f32.mrf.mxu3  ;;  %v676_v1 = vadd.f32 %v675_v57, %v663_v58 }
  0xe7   :  { %v688_v60 = vpop.f32.mrf.mxu2 }
  0xe8   :  { %v689_v62 = vadd.f32 %v688_v60, %v676_v1  ;;  %v677_v63 = vpop.f32.mrf.mxu0 }
  0xea   :  { %v702_v2 = vadd.f32 %v701_v55, %v689_v62 }
  0xec   :  { %v708_v3 = vmin.f32 %v702_v2, 0.0  ;;  %vm706_vm2 = vcmp.gt.f32.partialorder %v702_v2, 0.0 }
  0xee   :  { %v711_v5 = vmul.f32 1.442695, %v708_v3 }
  0xef   :  { %v690_v6 = vpop.f32.mrf.mxu2 }
  0xf0   :  { %1403 = vpow2.f32 %v711_v5 }
  0xf6   :  { %v1404_v61 = vpop.eup %1403 }
  0xf7   :  { %v1234_v7 = vadd.f32 -1.0, %v1404_v61 }
  0xf9   :  { %v716_v8 = vsel %vm706_vm2, %v702_v2, %v1234_v7 }
  0xfa   :  { %v718_v10 = vpack.c.bf16 %v716_v8, %v716_v8 }
  0xfc   :  { %872 = vmatmul.bf16.vlgmr.msrb.gmra.mxu3 %v718_v10 }
 0x152   :  { %v860_v4 = vpop.f32.mrf.mxu1 }
 0x153   :  { %v861_v13 = vadd.f32 %v1400_v12, %v860_v4 }
 0x15a   :  { %v862_v11 = vpop.f32.mrf.mxu1 }
 0x17f   :  { %v873_v14 = vpop.f32.mrf.mxu3 }
 0x180   :  { %v874_v15 = vadd.f32 %v873_v14, %v861_v13 }
 0x182   :  { %878 = vst.msk [vmem:[#allocation2] sm:$0x3] %vm877_vm3, %v874_v15 }
 0x183   :  { %889 = dma.vmem_to_hbm [thread:$0]  %s885_s30, 32, %s887_s8, [#allocation3]  }
 0x187   :  { %v875_v16 = vpop.f32.mrf.mxu3 }
 0x188   :  { %1429 = dma.done.wait [#allocation3], 32  }
 0x189   :  { %1430 = vsyncadd [#allocation3], 4294967264 }
 0x18a   :  { %894 = vsyncpa [#allocation3], 1 }

</bundles_post_ra>
